<compile_context>
chip_gen: v7x
topology: tpu7x:2x2x1
jax: 0.10.0
libtpu: 0.0.40
codegen_flags: <defaults>
</compile_context>

<pallas_src>
import numpy as np

import jax
import jax.numpy as jnp
from jax.experimental import pallas as pl
from jax.experimental.pallas import tpu as pltpu


# ------------------------------ fused batched kernel ------------------------------ #

def _cnn_fused_kernel(x_ref, w1b_ref, b1l_ref, w2b_ref, b2l_ref, wf_ref, bf_ref,
                      out_ref, p1_scr, p2_scr):
    """One grid step = TB samples (b = local sample index, 8-row block per sample).

    Layouts:
      x_ref  (1,4,TB*8+8,32): x_ref[0,s,8b+u,tx] = zero-padded input row 4u+s, padded
                              col tx of sample b (last 8 rows: zero halo).
      conv1 phase p         : row 8b+i = output row 4i+p,
                              lane 128*wp + (j+1)*8 + co = output col 2j+wp, chan co.
      pool1 (p1e/p1o)       : row 8b+i = pool row 2i / 2i+1,
                              lane tx2*8+ci = padded pool col tx2 (0,15 = zero pad),
                              i.e. already the conv2 input layout.
      conv2 even/odd        : row 8b+k = output row 2k / 2k+1,
                              lane 128*wq + j2*16 + co = output col 2*j2+wq, chan co.
      pool2 (p2)            : row 8b+h = pool row h, lane w*16+co.
      out_ref (TB,128)      : logits in lanes 0..9.
    """
    f32 = jnp.float32
    bf16 = jnp.bfloat16
    tb = out_ref.shape[0]
    n8 = tb * 8

    # Hoisted bias broadcasts (JAX does not CSE broadcast_in_dim).
    b1 = jnp.broadcast_to(b1l_ref[...], (n8, 256))
    b2 = jnp.broadcast_to(b2l_ref[...], (n8, 256))

    # Row 7 of every 8-row block of the pooled slabs must be *exactly* zero: it acts as
    # conv2's vertical zero padding (read through the shifted scratch views below).
    row_in_blk = jax.lax.broadcasted_iota(jnp.int32, (n8, 1), 0) % 8
    keep = row_in_blk < 7

    # ---- conv1 (1->8, 3x3, pad 1) + ReLU: 4 H-phases, W-pool phases fused along N ----
    def conv1_phase(p):
        acc = b1
        for dy in range(3):
            s = (p + dy) % 4
            c = (p + dy) // 4
            lhs = x_ref[0, s, c:c + n8, :]                          # (n8, 32) bf16
            acc = acc + jnp.dot(lhs, w1b_ref[dy],
                                preferred_element_type=f32)         # (n8, 256) f32
        return jnp.maximum(acc, 0.0)

    def pool_pair(a, b_):
        # 2x2 max-pool: rows via the two H-phases, cols via the two 128-lane halves.
        m = jnp.maximum(jnp.maximum(a[:, :128], a[:, 128:]),
                        jnp.maximum(b_[:, :128], b_[:, 128:]))
        return jnp.where(keep, m, 0.0)

    p1e = pool_pair(conv1_phase(0), conv1_phase(1)).astype(bf16)     # pool rows 2i
    p1o = pool_pair(conv1_phase(2), conv1_phase(3)).astype(bf16)     # pool rows 2i+1

    # ---- pool1 halo scratch: rows [1:1+n8] hold the pooled slabs; rows 0 and n8+1 are
    #      the vertical zero halo.  Only those 2 halo rows are zeroed (every step ->
    #      megacore-safe; interior is fully rewritten each step). ----
    zrow = jnp.zeros((2, 1, 128), bf16)
    p1_scr[:, 0:1, :] = zrow
    p1_scr[:, n8 + 1:n8 + 2, :] = zrow
    p1_scr[0, 1:1 + n8, :] = p1e
    p1_scr[1, 1:1 + n8, :] = p1o
    p1e_dn = p1_scr[0, 2:2 + n8, :]     # p1e shifted by +1 row (vertical tap t2 = 2k+3)
    p1o_up = p1_scr[1, 0:n8, :]         # p1o shifted by -1 row (vertical tap t2 = 2k)

    # ---- conv2 (8->16, 3x3, pad 1) + ReLU: 2 H-phases, W-pool phases fused along N ----
    acc_e = b2 + jnp.dot(p1o_up, w2b_ref[0], preferred_element_type=f32)
    acc_e = acc_e + jnp.dot(p1e, w2b_ref[1], preferred_element_type=f32)
    acc_e = acc_e + jnp.dot(p1o, w2b_ref[2], preferred_element_type=f32)
    c2e = jnp.maximum(acc_e, 0.0)                                    # output rows 2k

    acc_o = b2 + jnp.dot(p1e, w2b_ref[0], preferred_element_type=f32)
    acc_o = acc_o + jnp.dot(p1o, w2b_ref[1], preferred_element_type=f32)
    acc_o = acc_o + jnp.dot(p1e_dn, w2b_ref[2], preferred_element_type=f32)
    c2o = jnp.maximum(acc_o, 0.0)                                    # output rows 2k+1

    # ---- maxpool2 (2x2): phase max over rows, lane-half max over cols ----
    p2 = jnp.maximum(jnp.maximum(c2e[:, :128], c2e[:, 128:]),
                     jnp.maximum(c2o[:, :128], c2o[:, 128:]))        # (n8, 128) f32

    # ---- fc1 (784 -> 10, padded to 128 lanes): single (TB, 896) @ (896, 128) dot ----
    p2_scr[...] = p2.reshape(tb, 8, 128)
    a = jnp.concatenate([p2_scr[:, h, :] for h in range(7)], axis=1)  # (TB, 896)
    out_ref[...] = jnp.dot(a, wf_ref[...], preferred_element_type=f32) + bf_ref[...]


# --------------------------- one-time parameter preparation ------------------------ #

def prep_params(params, matmul_dtype=jnp.bfloat16):
    """Pre-bake banded conv weights / lane-tiled biases / flattened fc weight.

    Call ONCE outside the jitted forward (perf review: hoist prep out of the call path).
    """
    w1, b1, w2, b2, wf, bf = [np.asarray(p, np.float32) for p in params]

    # conv1: W1B[dy][tx, 128*wp + (j+1)*8 + co] = w1[co, 0, dy, dx] with tx = 2j+wp+dx.
    w1b = np.zeros((3, 32, 256), np.float32)
    b1l = np.zeros((1, 256), np.float32)
    for wp in range(2):
        for j in range(14):
            lo = 128 * wp + (j + 1) * 8
            b1l[0, lo:lo + 8] = b1
            for dy in range(3):
                for dx in range(3):
                    w1b[dy, 2 * j + wp + dx, lo:lo + 8] = w1[:, 0, dy, dx]

    # conv2: W2B[dy][tx2*8 + ci, 128*wq + j2*16 + co] = w2[co, ci, dy, dx],
    #        tx2 = 2*j2 + wq + dx (padded pool1 column).
    w2b = np.zeros((3, 128, 256), np.float32)
    b2l = np.zeros((1, 256), np.float32)
    for wq in range(2):
        for j2 in range(7):
            lo = 128 * wq + j2 * 16
            b2l[0, lo:lo + 16] = b2
            for dy in range(3):
                for dx in range(3):
                    tx2 = 2 * j2 + wq + dx
                    w2b[dy, tx2 * 8:(tx2 + 1) * 8, lo:lo + 16] = w2[:, :, dy, dx].T

    # fc1: WF[h*128 + w*16 + co, o] = wf[o, co*49 + h*7 + w]; logits in lanes 0..9.
    wf4 = wf.reshape(10, 16, 7, 7)                                   # [o, co, h, w]
    wfb = np.zeros((896, 128), np.float32)
    for h in range(7):
        for w in range(7):
            lo = h * 128 + w * 16
            wfb[lo:lo + 16, 0:10] = wf4[:, :, h, w].T
    bfb = np.zeros((1, 128), np.float32)
    bfb[0, :10] = bf

    return (jnp.asarray(w1b, matmul_dtype), jnp.asarray(b1l),
            jnp.asarray(w2b, matmul_dtype), jnp.asarray(b2l),
            jnp.asarray(wfb), jnp.asarray(bfb))


# ------------------------------- input layout prep --------------------------------- #

def _prep_input(x_nchw, tb, grid):
    """(B,1,28,28) -> (grid, 4, tb*8+8, 32) bf16, H-phase-split by 4 with zero halos."""
    bsz = x_nchw.shape[0]
    bp = tb * grid
    x = x_nchw.reshape(bsz, 28, 28).astype(jnp.float32)
    if bp > bsz:
        x = jnp.pad(x, ((0, bp - bsz), (0, 0), (0, 0)))
    xpad = jnp.pad(x, ((0, 0), (1, 3), (1, 3)))                # (bp, 32, 32), rows/cols 1..28 live
    xs = xpad.reshape(bp, 8, 4, 32)                            # [b, u, s, tx]
    xs = jnp.transpose(xs, (2, 0, 1, 3)).reshape(4, grid, tb * 8, 32)
    xs = jnp.pad(xs, ((0, 0), (0, 0), (0, 8), (0, 0)))         # per-block bottom zero halo
    xs = jnp.transpose(xs, (1, 0, 2, 3))                       # (grid, 4, tb*8+8, 32)
    return xs.astype(jnp.bfloat16)


# --------------------------------- CNN forward -------------------------------------- #

def cnn_forward_pallas(x_nchw, prepped, tb=64):
    """Pallas forward.  x_nchw: (B, 1, 28, 28) float32; prepped = prep_params(params)."""
    bsz = x_nchw.shape[0]
    tb = max(1, min(tb, bsz))          # M = tb*8 per conv dot; tb=64 -> M=512
    grid = -(-bsz // tb)
    n8 = tb * 8
    xs = _prep_input(x_nchw, tb, grid)
    w1b, b1l, w2b, b2l, wfb, bfb = prepped

    out = pl.pallas_call(
        _cnn_fused_kernel,
        out_shape=jax.ShapeDtypeStruct((grid * tb, 128), jnp.float32),
        grid=(grid,),
        in_specs=[
            pl.BlockSpec((1, 4, n8 + 8, 32), lambda g: (g, 0, 0, 0)),  # per-block input
            pl.BlockSpec((3, 32, 256), lambda g: (0, 0, 0)),           # conv1 banded W (bf16)
            pl.BlockSpec((1, 256), lambda g: (0, 0)),                  # conv1 bias, lane-tiled
            pl.BlockSpec((3, 128, 256), lambda g: (0, 0, 0)),          # conv2 banded W (bf16)
            pl.BlockSpec((1, 256), lambda g: (0, 0)),                  # conv2 bias, lane-tiled
            pl.BlockSpec((896, 128), lambda g: (0, 0)),                # fc1 W (flattened layout)
            pl.BlockSpec((1, 128), lambda g: (0, 0)),                  # fc1 bias (padded)
        ],
        out_specs=pl.BlockSpec((tb, 128), lambda g: (g, 0)),           # lane-dense logits
        scratch_shapes=[
            pltpu.VMEM((2, n8 + 8, 128), jnp.bfloat16),  # pool1 slabs + vertical zero halo
            pltpu.VMEM((tb, 8, 128), jnp.float32),       # pool2, re-read per h for fc1
        ],
        compiler_params=pltpu.CompilerParams(
            dimension_semantics=("parallel",),
            vmem_limit_bytes=32 * 1024 * 1024),
    )(xs, w1b, b1l, w2b, b2l, wfb, bfb)

    return out[:bsz, :10]


# ----------------------------- deterministic parameters ----------------------------- #

def init_params(key):
    ks = jax.random.split(key, 6)

    def unif(k, shape, fan_in):
        bound = 1.0 / (fan_in ** 0.5)
        return jax.random.uniform(k, shape, jnp.float32, -bound, bound)

    w1 = unif(ks[0], (8, 1, 3, 3), 1 * 9)            # conv1 weight (OIHW)
    b1 = unif(ks[1], (8,), 1 * 9)
    w2 = unif(ks[2], (16, 8, 3, 3), 8 * 9)           # conv2 weight (OIHW)
    b2 = unif(ks[3], (16,), 8 * 9)
    wf = unif(ks[4], (10, 16 * 7 * 7), 16 * 7 * 7)   # fc1 weight (out, in)
    bf = unif(ks[5], (10,), 16 * 7 * 7)
    return (w1, b1, w2, b2, wf, bf)


# -------------------------------- pure-JAX reference -------------------------------- #

def cnn_forward_reference(x_nchw, params):
    w1, b1, w2, b2, wf, bf = params
    dn = ("NCHW", "OIHW", "NCHW")
    hp = jax.lax.Precision.HIGHEST
    y = jax.lax.conv_general_dilated(x_nchw, w1, (1, 1), ((1, 1), (1, 1)),
                                     dimension_numbers=dn, precision=hp)
    y = jax.nn.relu(y + b1[None, :, None, None])
    y = jax.lax.reduce_window(y, -jnp.inf, jax.lax.max, (1, 1, 2, 2), (1, 1, 2, 2), "VALID")
    y = jax.lax.conv_general_dilated(y, w2, (1, 1), ((1, 1), (1, 1)),
                                     dimension_numbers=dn, precision=hp)
    y = jax.nn.relu(y + b2[None, :, None, None])
    y = jax.lax.reduce_window(y, -jnp.inf, jax.lax.max, (1, 1, 2, 2), (1, 1, 2, 2), "VALID")
    y = y.reshape(y.shape[0], -1)
    return y @ wf.T + bf[None, :]


if __name__ == "__main__":
    key = jax.random.PRNGKey(0)
    pkey, xkey = jax.random.split(key)
    params = init_params(pkey)
    prepped = prep_params(params)          # hoisted out of the per-call path

    # fc1 expects 16*7*7 features => 28x28 single-channel inputs (MNIST-like).
    x = jax.random.normal(xkey, (2, 1, 28, 28), jnp.float32)

    fwd = jax.jit(lambda xb: cnn_forward_pallas(xb, prepped))
    out = jax.block_until_ready(fwd(x))
    ref = jax.block_until_ready(cnn_forward_reference(x, params))

    assert out.shape == (2, 10), out.shape
    max_err = float(jnp.max(jnp.abs(out - ref)))
    assert jnp.allclose(out, ref, atol=2e-2, rtol=2e-2), max_err
    print("KERNEL_OK")
</pallas_src>

<mosaic_0001>
module attributes {stable_mosaic.version = 11 : i64} {
  func.func @_cnn_fused_kernel(%arg0: i32, %arg1: memref<1x4x24x32xbf16, #tpu.memory_space<vmem>>, %arg2: memref<3x32x256xbf16, #tpu.memory_space<vmem>>, %arg3: memref<1x256xf32, #tpu.memory_space<vmem>>, %arg4: memref<3x128x256xbf16, #tpu.memory_space<vmem>>, %arg5: memref<1x256xf32, #tpu.memory_space<vmem>>, %arg6: memref<896x128xf32, #tpu.memory_space<vmem>>, %arg7: memref<1x128xf32, #tpu.memory_space<vmem>>, %arg8: memref<2x128xf32, #tpu.memory_space<vmem>>, %arg9: memref<2x24x128xbf16, #tpu.memory_space<vmem>>, %arg10: memref<2x8x128xf32, #tpu.memory_space<vmem>>) attributes {dimension_semantics = [#tpu.dimension_semantics<parallel>], iteration_bounds = array<i64: 1>, scalar_prefetch = 0 : i64, scratch_operands = 2 : i64, tpu.core_type = #tpu.core_type<tc>, window_params = [{transform_indices = @transform_0, window_bounds = array<i64: 1, 4, 24, 32>}, {pipeline_mode = #tpu.pipeline_mode<synchronous>, transform_indices = @transform_1, window_bounds = array<i64: 3, 32, 256>}, {pipeline_mode = #tpu.pipeline_mode<synchronous>, transform_indices = @transform_2, window_bounds = array<i64: 1, 256>}, {pipeline_mode = #tpu.pipeline_mode<synchronous>, transform_indices = @transform_3, window_bounds = array<i64: 3, 128, 256>}, {pipeline_mode = #tpu.pipeline_mode<synchronous>, transform_indices = @transform_4, window_bounds = array<i64: 1, 256>}, {pipeline_mode = #tpu.pipeline_mode<synchronous>, transform_indices = @transform_5, window_bounds = array<i64: 896, 128>}, {pipeline_mode = #tpu.pipeline_mode<synchronous>, transform_indices = @transform_6, window_bounds = array<i64: 1, 128>}, {transform_indices = @transform_7, window_bounds = array<i64: 2, 128>}]} {
    %c0 = arith.constant 0 : index
    %c0_0 = arith.constant 0 : index
    %0 = vector.load %arg3[%c0, %c0_0] : memref<1x256xf32, #tpu.memory_space<vmem>>, vector<1x256xf32>
    %1 = vector.shape_cast %0 : vector<1x256xf32> to vector<1x256xf32>
    %2 = vector.broadcast %1 : vector<1x256xf32> to vector<16x256xf32>
    %c0_1 = arith.constant 0 : index
    %c0_2 = arith.constant 0 : index
    %3 = vector.load %arg5[%c0_1, %c0_2] : memref<1x256xf32, #tpu.memory_space<vmem>>, vector<1x256xf32>
    %4 = vector.shape_cast %3 : vector<1x256xf32> to vector<1x256xf32>
    %5 = vector.broadcast %4 : vector<1x256xf32> to vector<16x256xf32>
    %6 = tpu.iota {dimensions = array<i32: 0>} : vector<16x1xi32>
    %c8_i32 = arith.constant 8 : i32
    %c0_i32 = arith.constant 0 : i32
    %7 = arith.cmpi eq, %c8_i32, %c0_i32 : i32
    %c1_i32 = arith.constant 1 : i32
    %8 = arith.select %7, %c1_i32, %c8_i32 : i32
    %9 = vector.broadcast %8 : i32 to vector<16x1xi32>
    %10 = arith.remsi %6, %9 : vector<16x1xi32>
    %c0_i32_3 = arith.constant 0 : i32
    %11 = vector.broadcast %c0_i32_3 : i32 to vector<16x1xi32>
    %12 = arith.cmpi ne, %10, %11 : vector<16x1xi32>
    %c0_i32_4 = arith.constant 0 : i32
    %13 = vector.broadcast %c0_i32_4 : i32 to vector<16x1xi32>
    %14 = arith.cmpi slt, %10, %13 : vector<16x1xi32>
    %c0_i32_5 = arith.constant 0 : i32
    %15 = arith.cmpi slt, %8, %c0_i32_5 : i32
    %16 = vector.broadcast %15 : i1 to vector<16x1xi1>
    %17 = vector.broadcast %16 : vector<16x1xi1> to vector<16x1xi1>
    %18 = arith.xori %14, %17 : vector<16x1xi1>
    %19 = arith.andi %18, %12 : vector<16x1xi1>
    %20 = vector.broadcast %8 : i32 to vector<16x1xi32>
    %21 = arith.addi %10, %20 : vector<16x1xi32>
    %22 = arith.select %19, %21, %10 : vector<16x1xi1>, vector<16x1xi32>
    %c7_i32 = arith.constant 7 : i32
    %23 = vector.broadcast %c7_i32 : i32 to vector<16x1xi32>
    %24 = arith.cmpi slt, %22, %23 : vector<16x1xi32>
    %c0_6 = arith.constant 0 : index
    %c0_7 = arith.constant 0 : index
    %c0_8 = arith.constant 0 : index
    %c0_9 = arith.constant 0 : index
    %25 = vector.load %arg1[%c0_6, %c0_7, %c0_8, %c0_9] : memref<1x4x24x32xbf16, #tpu.memory_space<vmem>>, vector<1x1x16x32xbf16>
    %26 = vector.shape_cast %25 : vector<1x1x16x32xbf16> to vector<16x32xbf16>
    %c0_10 = arith.constant 0 : index
    %c0_11 = arith.constant 0 : index
    %c0_12 = arith.constant 0 : index
    %27 = vector.load %arg2[%c0_10, %c0_11, %c0_12] : memref<3x32x256xbf16, #tpu.memory_space<vmem>>, vector<1x32x256xbf16>
    %28 = vector.shape_cast %27 : vector<1x32x256xbf16> to vector<32x256xbf16>
    %cst = arith.constant dense<0.000000e+00> : vector<16x256xf32>
    %29 = tpu.matmul %26, %28, %cst {dimension_numbers = #tpu.dot_dimension_numbers<[1], [0], [0], [1], [0, 0, 1, 1], [], []>} : vector<16x32xbf16>, vector<32x256xbf16>, vector<16x256xf32> -> vector<16x256xf32>
    %30 = arith.addf %2, %29 : vector<16x256xf32>
    %c0_13 = arith.constant 0 : index
    %c1 = arith.constant 1 : index
    %c0_14 = arith.constant 0 : index
    %c0_15 = arith.constant 0 : index
    %31 = vector.load %arg1[%c0_13, %c1, %c0_14, %c0_15] : memref<1x4x24x32xbf16, #tpu.memory_space<vmem>>, vector<1x1x16x32xbf16>
    %32 = vector.shape_cast %31 : vector<1x1x16x32xbf16> to vector<16x32xbf16>
    %c1_16 = arith.constant 1 : index
    %c0_17 = arith.constant 0 : index
    %c0_18 = arith.constant 0 : index
    %33 = vector.load %arg2[%c1_16, %c0_17, %c0_18] : memref<3x32x256xbf16, #tpu.memory_space<vmem>>, vector<1x32x256xbf16>
    %34 = vector.shape_cast %33 : vector<1x32x256xbf16> to vector<32x256xbf16>
    %cst_19 = arith.constant dense<0.000000e+00> : vector<16x256xf32>
    %35 = tpu.matmul %32, %34, %cst_19 {dimension_numbers = #tpu.dot_dimension_numbers<[1], [0], [0], [1], [0, 0, 1, 1], [], []>} : vector<16x32xbf16>, vector<32x256xbf16>, vector<16x256xf32> -> vector<16x256xf32>
    %36 = arith.addf %30, %35 : vector<16x256xf32>
    %c0_20 = arith.constant 0 : index
    %c2 = arith.constant 2 : index
    %c0_21 = arith.constant 0 : index
    %c0_22 = arith.constant 0 : index
    %37 = vector.load %arg1[%c0_20, %c2, %c0_21, %c0_22] : memref<1x4x24x32xbf16, #tpu.memory_space<vmem>>, vector<1x1x16x32xbf16>
    %38 = vector.shape_cast %37 : vector<1x1x16x32xbf16> to vector<16x32xbf16>
    %c2_23 = arith.constant 2 : index
    %c0_24 = arith.constant 0 : index
    %c0_25 = arith.constant 0 : index
    %39 = vector.load %arg2[%c2_23, %c0_24, %c0_25] : memref<3x32x256xbf16, #tpu.memory_space<vmem>>, vector<1x32x256xbf16>
    %40 = vector.shape_cast %39 : vector<1x32x256xbf16> to vector<32x256xbf16>
    %cst_26 = arith.constant dense<0.000000e+00> : vector<16x256xf32>
    %41 = tpu.matmul %38, %40, %cst_26 {dimension_numbers = #tpu.dot_dimension_numbers<[1], [0], [0], [1], [0, 0, 1, 1], [], []>} : vector<16x32xbf16>, vector<32x256xbf16>, vector<16x256xf32> -> vector<16x256xf32>
    %42 = arith.addf %36, %41 : vector<16x256xf32>
    %cst_27 = arith.constant 0.000000e+00 : f32
    %43 = vector.broadcast %cst_27 : f32 to vector<16x256xf32>
    %44 = arith.maximumf %42, %43 : vector<16x256xf32>
    %c0_28 = arith.constant 0 : index
    %c1_29 = arith.constant 1 : index
    %c0_30 = arith.constant 0 : index
    %c0_31 = arith.constant 0 : index
    %45 = vector.load %arg1[%c0_28, %c1_29, %c0_30, %c0_31] : memref<1x4x24x32xbf16, #tpu.memory_space<vmem>>, vector<1x1x16x32xbf16>
    %46 = vector.shape_cast %45 : vector<1x1x16x32xbf16> to vector<16x32xbf16>
    %c0_32 = arith.constant 0 : index
    %c0_33 = arith.constant 0 : index
    %c0_34 = arith.constant 0 : index
    %47 = vector.load %arg2[%c0_32, %c0_33, %c0_34] : memref<3x32x256xbf16, #tpu.memory_space<vmem>>, vector<1x32x256xbf16>
    %48 = vector.shape_cast %47 : vector<1x32x256xbf16> to vector<32x256xbf16>
    %cst_35 = arith.constant dense<0.000000e+00> : vector<16x256xf32>
    %49 = tpu.matmul %46, %48, %cst_35 {dimension_numbers = #tpu.dot_dimension_numbers<[1], [0], [0], [1], [0, 0, 1, 1], [], []>} : vector<16x32xbf16>, vector<32x256xbf16>, vector<16x256xf32> -> vector<16x256xf32>
    %50 = arith.addf %2, %49 : vector<16x256xf32>
    %c0_36 = arith.constant 0 : index
    %c2_37 = arith.constant 2 : index
    %c0_38 = arith.constant 0 : index
    %c0_39 = arith.constant 0 : index
    %51 = vector.load %arg1[%c0_36, %c2_37, %c0_38, %c0_39] : memref<1x4x24x32xbf16, #tpu.memory_space<vmem>>, vector<1x1x16x32xbf16>
    %52 = vector.shape_cast %51 : vector<1x1x16x32xbf16> to vector<16x32xbf16>
    %c1_40 = arith.constant 1 : index
    %c0_41 = arith.constant 0 : index
    %c0_42 = arith.constant 0 : index
    %53 = vector.load %arg2[%c1_40, %c0_41, %c0_42] : memref<3x32x256xbf16, #tpu.memory_space<vmem>>, vector<1x32x256xbf16>
    %54 = vector.shape_cast %53 : vector<1x32x256xbf16> to vector<32x256xbf16>
    %cst_43 = arith.constant dense<0.000000e+00> : vector<16x256xf32>
    %55 = tpu.matmul %52, %54, %cst_43 {dimension_numbers = #tpu.dot_dimension_numbers<[1], [0], [0], [1], [0, 0, 1, 1], [], []>} : vector<16x32xbf16>, vector<32x256xbf16>, vector<16x256xf32> -> vector<16x256xf32>
    %56 = arith.addf %50, %55 : vector<16x256xf32>
    %c0_44 = arith.constant 0 : index
    %c3 = arith.constant 3 : index
    %c0_45 = arith.constant 0 : index
    %c0_46 = arith.constant 0 : index
    %57 = vector.load %arg1[%c0_44, %c3, %c0_45, %c0_46] : memref<1x4x24x32xbf16, #tpu.memory_space<vmem>>, vector<1x1x16x32xbf16>
    %58 = vector.shape_cast %57 : vector<1x1x16x32xbf16> to vector<16x32xbf16>
    %c2_47 = arith.constant 2 : index
    %c0_48 = arith.constant 0 : index
    %c0_49 = arith.constant 0 : index
    %59 = vector.load %arg2[%c2_47, %c0_48, %c0_49] : memref<3x32x256xbf16, #tpu.memory_space<vmem>>, vector<1x32x256xbf16>
    %60 = vector.shape_cast %59 : vector<1x32x256xbf16> to vector<32x256xbf16>
    %cst_50 = arith.constant dense<0.000000e+00> : vector<16x256xf32>
    %61 = tpu.matmul %58, %60, %cst_50 {dimension_numbers = #tpu.dot_dimension_numbers<[1], [0], [0], [1], [0, 0, 1, 1], [], []>} : vector<16x32xbf16>, vector<32x256xbf16>, vector<16x256xf32> -> vector<16x256xf32>
    %62 = arith.addf %56, %61 : vector<16x256xf32>
    %cst_51 = arith.constant 0.000000e+00 : f32
    %63 = vector.broadcast %cst_51 : f32 to vector<16x256xf32>
    %64 = arith.maximumf %62, %63 : vector<16x256xf32>
    %65 = vector.extract_strided_slice %44 {offsets = [0, 0], sizes = [16, 128], strides = [1, 1]} : vector<16x256xf32> to vector<16x128xf32>
    %66 = vector.extract_strided_slice %44 {offsets = [0, 128], sizes = [16, 128], strides = [1, 1]} : vector<16x256xf32> to vector<16x128xf32>
    %67 = arith.maximumf %65, %66 : vector<16x128xf32>
    %68 = vector.extract_strided_slice %64 {offsets = [0, 0], sizes = [16, 128], strides = [1, 1]} : vector<16x256xf32> to vector<16x128xf32>
    %69 = vector.extract_strided_slice %64 {offsets = [0, 128], sizes = [16, 128], strides = [1, 1]} : vector<16x256xf32> to vector<16x128xf32>
    %70 = arith.maximumf %68, %69 : vector<16x128xf32>
    %71 = arith.maximumf %67, %70 : vector<16x128xf32>
    %cst_52 = arith.constant 0.000000e+00 : f32
    %72 = vector.shape_cast %24 : vector<16x1xi1> to vector<16x1xi1>
    %73 = vector.broadcast %72 : vector<16x1xi1> to vector<16x128xi1>
    %74 = vector.broadcast %cst_52 : f32 to vector<16x128xf32>
    %75 = arith.select %73, %71, %74 : vector<16x128xi1>, vector<16x128xf32>
    %76 = arith.truncf %75 : vector<16x128xf32> to vector<16x128xbf16>
    %c0_53 = arith.constant 0 : index
    %c2_54 = arith.constant 2 : index
    %c0_55 = arith.constant 0 : index
    %c0_56 = arith.constant 0 : index
    %77 = vector.load %arg1[%c0_53, %c2_54, %c0_55, %c0_56] : memref<1x4x24x32xbf16, #tpu.memory_space<vmem>>, vector<1x1x16x32xbf16>
    %78 = vector.shape_cast %77 : vector<1x1x16x32xbf16> to vector<16x32xbf16>
    %c0_57 = arith.constant 0 : index
    %c0_58 = arith.constant 0 : index
    %c0_59 = arith.constant 0 : index
    %79 = vector.load %arg2[%c0_57, %c0_58, %c0_59] : memref<3x32x256xbf16, #tpu.memory_space<vmem>>, vector<1x32x256xbf16>
    %80 = vector.shape_cast %79 : vector<1x32x256xbf16> to vector<32x256xbf16>
    %cst_60 = arith.constant dense<0.000000e+00> : vector<16x256xf32>
    %81 = tpu.matmul %78, %80, %cst_60 {dimension_numbers = #tpu.dot_dimension_numbers<[1], [0], [0], [1], [0, 0, 1, 1], [], []>} : vector<16x32xbf16>, vector<32x256xbf16>, vector<16x256xf32> -> vector<16x256xf32>
    %82 = arith.addf %2, %81 : vector<16x256xf32>
    %c0_61 = arith.constant 0 : index
    %c3_62 = arith.constant 3 : index
    %c0_63 = arith.constant 0 : index
    %c0_64 = arith.constant 0 : index
    %83 = vector.load %arg1[%c0_61, %c3_62, %c0_63, %c0_64] : memref<1x4x24x32xbf16, #tpu.memory_space<vmem>>, vector<1x1x16x32xbf16>
    %84 = vector.shape_cast %83 : vector<1x1x16x32xbf16> to vector<16x32xbf16>
    %c1_65 = arith.constant 1 : index
    %c0_66 = arith.constant 0 : index
    %c0_67 = arith.constant 0 : index
    %85 = vector.load %arg2[%c1_65, %c0_66, %c0_67] : memref<3x32x256xbf16, #tpu.memory_space<vmem>>, vector<1x32x256xbf16>
    %86 = vector.shape_cast %85 : vector<1x32x256xbf16> to vector<32x256xbf16>
    %cst_68 = arith.constant dense<0.000000e+00> : vector<16x256xf32>
    %87 = tpu.matmul %84, %86, %cst_68 {dimension_numbers = #tpu.dot_dimension_numbers<[1], [0], [0], [1], [0, 0, 1, 1], [], []>} : vector<16x32xbf16>, vector<32x256xbf16>, vector<16x256xf32> -> vector<16x256xf32>
    %88 = arith.addf %82, %87 : vector<16x256xf32>
    %c0_69 = arith.constant 0 : index
    %c0_70 = arith.constant 0 : index
    %c1_71 = arith.constant 1 : index
    %c0_72 = arith.constant 0 : index
    %89 = vector.load %arg1[%c0_69, %c0_70, %c1_71, %c0_72] : memref<1x4x24x32xbf16, #tpu.memory_space<vmem>>, vector<1x1x16x32xbf16>
    %90 = vector.shape_cast %89 : vector<1x1x16x32xbf16> to vector<16x32xbf16>
    %c2_73 = arith.constant 2 : index
    %c0_74 = arith.constant 0 : index
    %c0_75 = arith.constant 0 : index
    %91 = vector.load %arg2[%c2_73, %c0_74, %c0_75] : memref<3x32x256xbf16, #tpu.memory_space<vmem>>, vector<1x32x256xbf16>
    %92 = vector.shape_cast %91 : vector<1x32x256xbf16> to vector<32x256xbf16>
    %cst_76 = arith.constant dense<0.000000e+00> : vector<16x256xf32>
    %93 = tpu.matmul %90, %92, %cst_76 {dimension_numbers = #tpu.dot_dimension_numbers<[1], [0], [0], [1], [0, 0, 1, 1], [], []>} : vector<16x32xbf16>, vector<32x256xbf16>, vector<16x256xf32> -> vector<16x256xf32>
    %94 = arith.addf %88, %93 : vector<16x256xf32>
    %cst_77 = arith.constant 0.000000e+00 : f32
    %95 = vector.broadcast %cst_77 : f32 to vector<16x256xf32>
    %96 = arith.maximumf %94, %95 : vector<16x256xf32>
    %c0_78 = arith.constant 0 : index
    %c3_79 = arith.constant 3 : index
    %c0_80 = arith.constant 0 : index
    %c0_81 = arith.constant 0 : index
    %97 = vector.load %arg1[%c0_78, %c3_79, %c0_80, %c0_81] : memref<1x4x24x32xbf16, #tpu.memory_space<vmem>>, vector<1x1x16x32xbf16>
    %98 = vector.shape_cast %97 : vector<1x1x16x32xbf16> to vector<16x32xbf16>
    %c0_82 = arith.constant 0 : index
    %c0_83 = arith.constant 0 : index
    %c0_84 = arith.constant 0 : index
    %99 = vector.load %arg2[%c0_82, %c0_83, %c0_84] : memref<3x32x256xbf16, #tpu.memory_space<vmem>>, vector<1x32x256xbf16>
    %100 = vector.shape_cast %99 : vector<1x32x256xbf16> to vector<32x256xbf16>
    %cst_85 = arith.constant dense<0.000000e+00> : vector<16x256xf32>
    %101 = tpu.matmul %98, %100, %cst_85 {dimension_numbers = #tpu.dot_dimension_numbers<[1], [0], [0], [1], [0, 0, 1, 1], [], []>} : vector<16x32xbf16>, vector<32x256xbf16>, vector<16x256xf32> -> vector<16x256xf32>
    %102 = arith.addf %2, %101 : vector<16x256xf32>
    %c0_86 = arith.constant 0 : index
    %c0_87 = arith.constant 0 : index
    %c1_88 = arith.constant 1 : index
    %c0_89 = arith.constant 0 : index
    %103 = vector.load %arg1[%c0_86, %c0_87, %c1_88, %c0_89] : memref<1x4x24x32xbf16, #tpu.memory_space<vmem>>, vector<1x1x16x32xbf16>
    %104 = vector.shape_cast %103 : vector<1x1x16x32xbf16> to vector<16x32xbf16>
    %c1_90 = arith.constant 1 : index
    %c0_91 = arith.constant 0 : index
    %c0_92 = arith.constant 0 : index
    %105 = vector.load %arg2[%c1_90, %c0_91, %c0_92] : memref<3x32x256xbf16, #tpu.memory_space<vmem>>, vector<1x32x256xbf16>
    %106 = vector.shape_cast %105 : vector<1x32x256xbf16> to vector<32x256xbf16>
    %cst_93 = arith.constant dense<0.000000e+00> : vector<16x256xf32>
    %107 = tpu.matmul %104, %106, %cst_93 {dimension_numbers = #tpu.dot_dimension_numbers<[1], [0], [0], [1], [0, 0, 1, 1], [], []>} : vector<16x32xbf16>, vector<32x256xbf16>, vector<16x256xf32> -> vector<16x256xf32>
    %108 = arith.addf %102, %107 : vector<16x256xf32>
    %c0_94 = arith.constant 0 : index
    %c1_95 = arith.constant 1 : index
    %c1_96 = arith.constant 1 : index
    %c0_97 = arith.constant 0 : index
    %109 = vector.load %arg1[%c0_94, %c1_95, %c1_96, %c0_97] : memref<1x4x24x32xbf16, #tpu.memory_space<vmem>>, vector<1x1x16x32xbf16>
    %110 = vector.shape_cast %109 : vector<1x1x16x32xbf16> to vector<16x32xbf16>
    %c2_98 = arith.constant 2 : index
    %c0_99 = arith.constant 0 : index
    %c0_100 = arith.constant 0 : index
    %111 = vector.load %arg2[%c2_98, %c0_99, %c0_100] : memref<3x32x256xbf16, #tpu.memory_space<vmem>>, vector<1x32x256xbf16>
    %112 = vector.shape_cast %111 : vector<1x32x256xbf16> to vector<32x256xbf16>
    %cst_101 = arith.constant dense<0.000000e+00> : vector<16x256xf32>
    %113 = tpu.matmul %110, %112, %cst_101 {dimension_numbers = #tpu.dot_dimension_numbers<[1], [0], [0], [1], [0, 0, 1, 1], [], []>} : vector<16x32xbf16>, vector<32x256xbf16>, vector<16x256xf32> -> vector<16x256xf32>
    %114 = arith.addf %108, %113 : vector<16x256xf32>
    %cst_102 = arith.constant 0.000000e+00 : f32
    %115 = vector.broadcast %cst_102 : f32 to vector<16x256xf32>
    %116 = arith.maximumf %114, %115 : vector<16x256xf32>
    %117 = vector.extract_strided_slice %96 {offsets = [0, 0], sizes = [16, 128], strides = [1, 1]} : vector<16x256xf32> to vector<16x128xf32>
    %118 = vector.extract_strided_slice %96 {offsets = [0, 128], sizes = [16, 128], strides = [1, 1]} : vector<16x256xf32> to vector<16x128xf32>
    %119 = arith.maximumf %117, %118 : vector<16x128xf32>
    %120 = vector.extract_strided_slice %116 {offsets = [0, 0], sizes = [16, 128], strides = [1, 1]} : vector<16x256xf32> to vector<16x128xf32>
    %121 = vector.extract_strided_slice %116 {offsets = [0, 128], sizes = [16, 128], strides = [1, 1]} : vector<16x256xf32> to vector<16x128xf32>
    %122 = arith.maximumf %120, %121 : vector<16x128xf32>
    %123 = arith.maximumf %119, %122 : vector<16x128xf32>
    %cst_103 = arith.constant 0.000000e+00 : f32
    %124 = vector.shape_cast %24 : vector<16x1xi1> to vector<16x1xi1>
    %125 = vector.broadcast %124 : vector<16x1xi1> to vector<16x128xi1>
    %126 = vector.broadcast %cst_103 : f32 to vector<16x128xf32>
    %127 = arith.select %125, %123, %126 : vector<16x128xi1>, vector<16x128xf32>
    %128 = arith.truncf %127 : vector<16x128xf32> to vector<16x128xbf16>
    %cst_104 = arith.constant 0.000000e+00 : bf16
    %129 = vector.broadcast %cst_104 : bf16 to vector<2x1x128xbf16>
    %c0_105 = arith.constant 0 : index
    %c0_106 = arith.constant 0 : index
    %c0_107 = arith.constant 0 : index
    %130 = vector.load %arg9[%c0_105, %c0_106, %c0_107] : memref<2x24x128xbf16, #tpu.memory_space<vmem>>, vector<2x1x128xbf16>
    tpu.vector_store %arg9[%c0_105, %c0_106, %c0_107], %129 {strides = array<i32>} : memref<2x24x128xbf16, #tpu.memory_space<vmem>>, vector<2x1x128xbf16>,
    %c0_108 = arith.constant 0 : index
    %c17 = arith.constant 17 : index
    %c0_109 = arith.constant 0 : index
    %131 = vector.load %arg9[%c0_108, %c17, %c0_109] : memref<2x24x128xbf16, #tpu.memory_space<vmem>>, vector<2x1x128xbf16>
    tpu.vector_store %arg9[%c0_108, %c17, %c0_109], %129 {strides = array<i32>} : memref<2x24x128xbf16, #tpu.memory_space<vmem>>, vector<2x1x128xbf16>,
    %c0_110 = arith.constant 0 : index
    %c1_111 = arith.constant 1 : index
    %c0_112 = arith.constant 0 : index
    %132 = vector.load %arg9[%c0_110, %c1_111, %c0_112] : memref<2x24x128xbf16, #tpu.memory_space<vmem>>, vector<1x16x128xbf16>
    %133 = vector.shape_cast %132 : vector<1x16x128xbf16> to vector<16x128xbf16>
    %134 = vector.shape_cast %76 : vector<16x128xbf16> to vector<1x16x128xbf16>
    tpu.vector_store %arg9[%c0_110, %c1_111, %c0_112], %134 {strides = array<i32>} : memref<2x24x128xbf16, #tpu.memory_space<vmem>>, vector<1x16x128xbf16>,
    %c1_113 = arith.constant 1 : index
    %c1_114 = arith.constant 1 : index
    %c0_115 = arith.constant 0 : index
    %135 = vector.load %arg9[%c1_113, %c1_114, %c0_115] : memref<2x24x128xbf16, #tpu.memory_space<vmem>>, vector<1x16x128xbf16>
    %136 = vector.shape_cast %135 : vector<1x16x128xbf16> to vector<16x128xbf16>
    %137 = vector.shape_cast %128 : vector<16x128xbf16> to vector<1x16x128xbf16>
    tpu.vector_store %arg9[%c1_113, %c1_114, %c0_115], %137 {strides = array<i32>} : memref<2x24x128xbf16, #tpu.memory_space<vmem>>, vector<1x16x128xbf16>,
    %c0_116 = arith.constant 0 : index
    %c2_117 = arith.constant 2 : index
    %c0_118 = arith.constant 0 : index
    %138 = vector.load %arg9[%c0_116, %c2_117, %c0_118] : memref<2x24x128xbf16, #tpu.memory_space<vmem>>, vector<1x16x128xbf16>
    %139 = vector.shape_cast %138 : vector<1x16x128xbf16> to vector<16x128xbf16>
    %c1_119 = arith.constant 1 : index
    %c0_120 = arith.constant 0 : index
    %c0_121 = arith.constant 0 : index
    %140 = vector.load %arg9[%c1_119, %c0_120, %c0_121] : memref<2x24x128xbf16, #tpu.memory_space<vmem>>, vector<1x16x128xbf16>
    %141 = vector.shape_cast %140 : vector<1x16x128xbf16> to vector<16x128xbf16>
    %c0_122 = arith.constant 0 : index
    %c0_123 = arith.constant 0 : index
    %c0_124 = arith.constant 0 : index
    %142 = vector.load %arg4[%c0_122, %c0_123, %c0_124] : memref<3x128x256xbf16, #tpu.memory_space<vmem>>, vector<1x128x256xbf16>
    %143 = vector.shape_cast %142 : vector<1x128x256xbf16> to vector<128x256xbf16>
    %cst_125 = arith.constant dense<0.000000e+00> : vector<16x256xf32>
    %144 = tpu.matmul %141, %143, %cst_125 {dimension_numbers = #tpu.dot_dimension_numbers<[1], [0], [0], [1], [0, 0, 1, 1], [], []>} : vector<16x128xbf16>, vector<128x256xbf16>, vector<16x256xf32> -> vector<16x256xf32>
    %145 = arith.addf %5, %144 : vector<16x256xf32>
    %c1_126 = arith.constant 1 : index
    %c0_127 = arith.constant 0 : index
    %c0_128 = arith.constant 0 : index
    %146 = vector.load %arg4[%c1_126, %c0_127, %c0_128] : memref<3x128x256xbf16, #tpu.memory_space<vmem>>, vector<1x128x256xbf16>
    %147 = vector.shape_cast %146 : vector<1x128x256xbf16> to vector<128x256xbf16>
    %cst_129 = arith.constant dense<0.000000e+00> : vector<16x256xf32>
    %148 = tpu.matmul %76, %147, %cst_129 {dimension_numbers = #tpu.dot_dimension_numbers<[1], [0], [0], [1], [0, 0, 1, 1], [], []>} : vector<16x128xbf16>, vector<128x256xbf16>, vector<16x256xf32> -> vector<16x256xf32>
    %149 = arith.addf %145, %148 : vector<16x256xf32>
    %c2_130 = arith.constant 2 : index
    %c0_131 = arith.constant 0 : index
    %c0_132 = arith.constant 0 : index
    %150 = vector.load %arg4[%c2_130, %c0_131, %c0_132] : memref<3x128x256xbf16, #tpu.memory_space<vmem>>, vector<1x128x256xbf16>
    %151 = vector.shape_cast %150 : vector<1x128x256xbf16> to vector<128x256xbf16>
    %cst_133 = arith.constant dense<0.000000e+00> : vector<16x256xf32>
    %152 = tpu.matmul %128, %151, %cst_133 {dimension_numbers = #tpu.dot_dimension_numbers<[1], [0], [0], [1], [0, 0, 1, 1], [], []>} : vector<16x128xbf16>, vector<128x256xbf16>, vector<16x256xf32> -> vector<16x256xf32>
    %153 = arith.addf %149, %152 : vector<16x256xf32>
    %cst_134 = arith.constant 0.000000e+00 : f32
    %154 = vector.broadcast %cst_134 : f32 to vector<16x256xf32>
    %155 = arith.maximumf %153, %154 : vector<16x256xf32>
    %c0_135 = arith.constant 0 : index
    %c0_136 = arith.constant 0 : index
    %c0_137 = arith.constant 0 : index
    %156 = vector.load %arg4[%c0_135, %c0_136, %c0_137] : memref<3x128x256xbf16, #tpu.memory_space<vmem>>, vector<1x128x256xbf16>
    %157 = vector.shape_cast %156 : vector<1x128x256xbf16> to vector<128x256xbf16>
    %cst_138 = arith.constant dense<0.000000e+00> : vector<16x256xf32>
    %158 = tpu.matmul %76, %157, %cst_138 {dimension_numbers = #tpu.dot_dimension_numbers<[1], [0], [0], [1], [0, 0, 1, 1], [], []>} : vector<16x128xbf16>, vector<128x256xbf16>, vector<16x256xf32> -> vector<16x256xf32>
    %159 = arith.addf %5, %158 : vector<16x256xf32>
    %c1_139 = arith.constant 1 : index
    %c0_140 = arith.constant 0 : index
    %c0_141 = arith.constant 0 : index
    %160 = vector.load %arg4[%c1_139, %c0_140, %c0_141] : memref<3x128x256xbf16, #tpu.memory_space<vmem>>, vector<1x128x256xbf16>
    %161 = vector.shape_cast %160 : vector<1x128x256xbf16> to vector<128x256xbf16>
    %cst_142 = arith.constant dense<0.000000e+00> : vector<16x256xf32>
    %162 = tpu.matmul %128, %161, %cst_142 {dimension_numbers = #tpu.dot_dimension_numbers<[1], [0], [0], [1], [0, 0, 1, 1], [], []>} : vector<16x128xbf16>, vector<128x256xbf16>, vector<16x256xf32> -> vector<16x256xf32>
    %163 = arith.addf %159, %162 : vector<16x256xf32>
    %c2_143 = arith.constant 2 : index
    %c0_144 = arith.constant 0 : index
    %c0_145 = arith.constant 0 : index
    %164 = vector.load %arg4[%c2_143, %c0_144, %c0_145] : memref<3x128x256xbf16, #tpu.memory_space<vmem>>, vector<1x128x256xbf16>
    %165 = vector.shape_cast %164 : vector<1x128x256xbf16> to vector<128x256xbf16>
    %cst_146 = arith.constant dense<0.000000e+00> : vector<16x256xf32>
    %166 = tpu.matmul %139, %165, %cst_146 {dimension_numbers = #tpu.dot_dimension_numbers<[1], [0], [0], [1], [0, 0, 1, 1], [], []>} : vector<16x128xbf16>, vector<128x256xbf16>, vector<16x256xf32> -> vector<16x256xf32>
    %167 = arith.addf %163, %166 : vector<16x256xf32>
    %cst_147 = arith.constant 0.000000e+00 : f32
    %168 = vector.broadcast %cst_147 : f32 to vector<16x256xf32>
    %169 = arith.maximumf %167, %168 : vector<16x256xf32>
    %170 = vector.extract_strided_slice %155 {offsets = [0, 0], sizes = [16, 128], strides = [1, 1]} : vector<16x256xf32> to vector<16x128xf32>
    %171 = vector.extract_strided_slice %155 {offsets = [0, 128], sizes = [16, 128], strides = [1, 1]} : vector<16x256xf32> to vector<16x128xf32>
    %172 = arith.maximumf %170, %171 : vector<16x128xf32>
    %173 = vector.extract_strided_slice %169 {offsets = [0, 0], sizes = [16, 128], strides = [1, 1]} : vector<16x256xf32> to vector<16x128xf32>
    %174 = vector.extract_strided_slice %169 {offsets = [0, 128], sizes = [16, 128], strides = [1, 1]} : vector<16x256xf32> to vector<16x128xf32>
    %175 = arith.maximumf %173, %174 : vector<16x128xf32>
    %176 = arith.maximumf %172, %175 : vector<16x128xf32>
    %177 = vector.shape_cast %176 : vector<16x128xf32> to vector<2x8x128xf32>
    %c0_148 = arith.constant 0 : index
    %c0_149 = arith.constant 0 : index
    %c0_150 = arith.constant 0 : index
    %178 = vector.load %arg10[%c0_148, %c0_149, %c0_150] : memref<2x8x128xf32, #tpu.memory_space<vmem>>, vector<2x8x128xf32>
    tpu.vector_store %arg10[%c0_148, %c0_149, %c0_150], %177 {strides = array<i32>} : memref<2x8x128xf32, #tpu.memory_space<vmem>>, vector<2x8x128xf32>,
    %c0_151 = arith.constant 0 : index
    %c0_152 = arith.constant 0 : index
    %c0_153 = arith.constant 0 : index
    %179 = vector.load %arg10[%c0_151, %c0_152, %c0_153] : memref<2x8x128xf32, #tpu.memory_space<vmem>>, vector<2x1x128xf32>
    %180 = vector.shape_cast %179 : vector<2x1x128xf32> to vector<2x128xf32>
    %c0_154 = arith.constant 0 : index
    %c1_155 = arith.constant 1 : index
    %c0_156 = arith.constant 0 : index
    %181 = vector.load %arg10[%c0_154, %c1_155, %c0_156] : memref<2x8x128xf32, #tpu.memory_space<vmem>>, vector<2x1x128xf32>
    %182 = vector.shape_cast %181 : vector<2x1x128xf32> to vector<2x128xf32>
    %c0_157 = arith.constant 0 : index
    %c2_158 = arith.constant 2 : index
    %c0_159 = arith.constant 0 : index
    %183 = vector.load %arg10[%c0_157, %c2_158, %c0_159] : memref<2x8x128xf32, #tpu.memory_space<vmem>>, vector<2x1x128xf32>
    %184 = vector.shape_cast %183 : vector<2x1x128xf32> to vector<2x128xf32>
    %c0_160 = arith.constant 0 : index
    %c3_161 = arith.constant 3 : index
    %c0_162 = arith.constant 0 : index
    %185 = vector.load %arg10[%c0_160, %c3_161, %c0_162] : memref<2x8x128xf32, #tpu.memory_space<vmem>>, vector<2x1x128xf32>
    %186 = vector.shape_cast %185 : vector<2x1x128xf32> to vector<2x128xf32>
    %c0_163 = arith.constant 0 : index
    %c4 = arith.constant 4 : index
    %c0_164 = arith.constant 0 : index
    %187 = vector.load %arg10[%c0_163, %c4, %c0_164] : memref<2x8x128xf32, #tpu.memory_space<vmem>>, vector<2x1x128xf32>
    %188 = vector.shape_cast %187 : vector<2x1x128xf32> to vector<2x128xf32>
    %c0_165 = arith.constant 0 : index
    %c5 = arith.constant 5 : index
    %c0_166 = arith.constant 0 : index
    %189 = vector.load %arg10[%c0_165, %c5, %c0_166] : memref<2x8x128xf32, #tpu.memory_space<vmem>>, vector<2x1x128xf32>
    %190 = vector.shape_cast %189 : vector<2x1x128xf32> to vector<2x128xf32>
    %c0_167 = arith.constant 0 : index
    %c6 = arith.constant 6 : index
    %c0_168 = arith.constant 0 : index
    %191 = vector.load %arg10[%c0_167, %c6, %c0_168] : memref<2x8x128xf32, #tpu.memory_space<vmem>>, vector<2x1x128xf32>
    %192 = vector.shape_cast %191 : vector<2x1x128xf32> to vector<2x128xf32>
    %193 = tpu.concatenate %180, %182, %184, %186, %188, %190, %192 in 1 : vector<2x128xf32>, vector<2x128xf32>, vector<2x128xf32>, vector<2x128xf32>, vector<2x128xf32>, vector<2x128xf32>, vector<2x128xf32> -> vector<2x896xf32>
    %c0_169 = arith.constant 0 : index
    %c0_170 = arith.constant 0 : index
    %194 = vector.load %arg6[%c0_169, %c0_170] : memref<896x128xf32, #tpu.memory_space<vmem>>, vector<896x128xf32>
    %cst_171 = arith.constant dense<0.000000e+00> : vector<2x128xf32>
    %195 = tpu.matmul %193, %194, %cst_171 {dimension_numbers = #tpu.dot_dimension_numbers<[1], [0], [0], [1], [0, 0, 1, 1], [], []>} : vector<2x896xf32>, vector<896x128xf32>, vector<2x128xf32> -> vector<2x128xf32>
    %c0_172 = arith.constant 0 : index
    %c0_173 = arith.constant 0 : index
    %196 = vector.load %arg7[%c0_172, %c0_173] : memref<1x128xf32, #tpu.memory_space<vmem>>, vector<1x128xf32>
    %197 = vector.broadcast %196 : vector<1x128xf32> to vector<2x128xf32>
    %198 = arith.addf %195, %197 : vector<2x128xf32>
    %c0_174 = arith.constant 0 : index
    %c0_175 = arith.constant 0 : index
    %199 = vector.load %arg8[%c0_174, %c0_175] : memref<2x128xf32, #tpu.memory_space<vmem>>, vector<2x128xf32>
    tpu.vector_store %arg8[%c0_174, %c0_175], %198 {strides = array<i32>} : memref<2x128xf32, #tpu.memory_space<vmem>>, vector<2x128xf32>,
    return
  }
  func.func @transform_0(%arg0: i32) -> (i32, i32, i32, i32) {
    %c0_i32 = arith.constant 0 : i32
    %c0_i32_0 = arith.constant 0 : i32
    %c0_i32_1 = arith.constant 0 : i32
    %c0_i32_2 = arith.constant 0 : i32
    return %arg0, %c0_i32, %c0_i32_0, %c0_i32_1 : i32, i32, i32, i32
  }
  func.func @transform_1(%arg0: i32) -> (i32, i32, i32) {
    %c0_i32 = arith.constant 0 : i32
    %c0_i32_0 = arith.constant 0 : i32
    %c0_i32_1 = arith.constant 0 : i32
    %c0_i32_2 = arith.constant 0 : i32
    return %c0_i32, %c0_i32_0, %c0_i32_1 : i32, i32, i32
  }
  func.func @transform_2(%arg0: i32) -> (i32, i32) {
    %c0_i32 = arith.constant 0 : i32
    %c0_i32_0 = arith.constant 0 : i32
    %c0_i32_1 = arith.constant 0 : i32
    return %c0_i32, %c0_i32_0 : i32, i32
  }
  func.func @transform_3(%arg0: i32) -> (i32, i32, i32) {
    %c0_i32 = arith.constant 0 : i32
    %c0_i32_0 = arith.constant 0 : i32
    %c0_i32_1 = arith.constant 0 : i32
    %c0_i32_2 = arith.constant 0 : i32
    return %c0_i32, %c0_i32_0, %c0_i32_1 : i32, i32, i32
  }
  func.func @transform_4(%arg0: i32) -> (i32, i32) {
    %c0_i32 = arith.constant 0 : i32
    %c0_i32_0 = arith.constant 0 : i32
    %c0_i32_1 = arith.constant 0 : i32
    return %c0_i32, %c0_i32_0 : i32, i32
  }
  func.func @transform_5(%arg0: i32) -> (i32, i32) {
    %c0_i32 = arith.constant 0 : i32
    %c0_i32_0 = arith.constant 0 : i32
    %c0_i32_1 = arith.constant 0 : i32
    return %c0_i32, %c0_i32_0 : i32, i32
  }
  func.func @transform_6(%arg0: i32) -> (i32, i32) {
    %c0_i32 = arith.constant 0 : i32
    %c0_i32_0 = arith.constant 0 : i32
    %c0_i32_1 = arith.constant 0 : i32
    return %c0_i32, %c0_i32_0 : i32, i32
  }
  func.func @transform_7(%arg0: i32) -> (i32, i32) {
    %c0_i32 = arith.constant 0 : i32
    %c0_i32_0 = arith.constant 0 : i32
    return %arg0, %c0_i32 : i32, i32
  }
}

</mosaic_0001>

<bundles_post_ra>
// kernel: _lambda_.1
= control target key start
LH: loop header
LB: loop body
LE: loop exit
PB: predicated region body
PF: predicated region fallthrough
CT: control target
= control target key end

     0   :  { %v2648_v2 = vmov 0   ;;  %vm112_vm0 = vcmask 261120   ;;  %s3487_s0 = inlined_call_operand.vmem [shape: bf16[1,4,24,32], index: 0, kind: input, shape index: {}]   ;;  %s3488_s1 = inlined_call_operand.vmem [shape: bf16[3,32,256], index: 1, kind: input, shape index: {}]   ;;  %s3489_s2 = inlined_call_operand.vmem [shape: f32[1,256], index: 2, kind: input, shape index: {}]   ;;  %s3490_s3 = inlined_call_operand.vmem [shape: bf16[3,128,256], index: 3, kind: input, shape index: {}]   ;;  %s3491_s4 = inlined_call_operand.vmem [shape: f32[1,256], index: 4, kind: input, shape index: {}]   ;;  %s3492_s5 = inlined_call_operand.vmem [shape: f32[896,128], index: 5, kind: input, shape index: {}]   ;;  %s3493_s6 = inlined_call_operand.vmem [shape: f32[1,128], index: 6, kind: input, shape index: {}]   ;;  %s3494_s7 = inlined_call_operand.hbm [shape: f32[2,128], index: 7, kind: output, shape index: {}]  }
   0x1   :  { %v2523_v0 = vld [vmem:[%s3488_s1 + $0x4] ss:$8 sps:$4 sm:$0xff]   ;;  %v2525_v1 = vld [vmem:[%s3488_s1] ss:$8 sps:$4 sm:$0xff]   ;;  %148 = vmatprep.mubr.bf16.mxu0 %v2648_v2  ;;  %365 = vmatprep.mubr.bf16.mxu1 %v2648_v2  ;;  %v2526_v3 = vld [vmem:[%s3488_s1 + $0x14] ss:$8 sps:$4 sm:$0xff]  }
   0x2   :  { %116 = vmatprep.subr.bf16.mxu0 %v2523_v0  ;;  %333 = vmatprep.subr.bf16.mxu1 %v2523_v0  ;;  %v2528_v4 = vld [vmem:[%s3488_s1 + $0x10] ss:$8 sps:$4 sm:$0xff]   ;;  %v2530_v5 = vld [vmem:[%s3488_s1 + $0x24] ss:$8 sps:$4 sm:$0xff]   ;;  %v2533_v8 = vld [vmem:[%s3488_s1 + $0x20] ss:$8 sps:$4 sm:$0xff]  }
   0x3   :  { %117 = vmatpush1.bf16.msra.mxu0 %v2525_v1  ;;  %334 = vmatpush1.bf16.msra.mxu1 %v2525_v1  ;;  %v2529_v6 = vld [vmem:[%s3487_s0] sm:$0xff]   ;;  %v2532_v7 = vld [vmem:[%s3487_s0 + $0xc] sm:$0xff]   ;;  %v2534_v9 = vld [vmem:[%s3488_s1 + $0x34] ss:$8 sps:$4 sm:$0xff]  }
   0x4   :  { %118 = vmatprep.subr.bf16.mxu0 %v2526_v3  ;;  %335 = vmatprep.subr.bf16.mxu1 %v2526_v3  ;;  %v2536_v10 = vld [vmem:[%s3488_s1 + $0x30] ss:$8 sps:$4 sm:$0xff]   ;;  %v2537_v11 = vld [vmem:[%s3488_s1 + $0x44] ss:$8 sps:$4 sm:$0xff]   ;;  %v2540_v13 = vld [vmem:[%s3488_s1 + $0x40] ss:$8 sps:$4 sm:$0xff]  }
   0x5   :  { %v2539_v12 = vld [vmem:[%s3487_s0 + $0x18] sm:$0xff]   ;;  %v2544_v16 = vld [vmem:[%s3487_s0 + $0x24] sm:$0xff]  }
   0x6   :  { %v2541_v14 = vld [vmem:[%s3488_s1 + $0x54] ss:$8 sps:$4 sm:$0xff]   ;;  %v2543_v15 = vld [vmem:[%s3488_s1 + $0x50] ss:$8 sps:$4 sm:$0xff]   ;;  %v2545_v17 = vld [vmem:[%s3487_s0] sm:$0xff]  }
   0x7   :  { %119 = vmatpush1.bf16.msra.mxu0 %v2528_v4  ;;  %336 = vmatpush1.bf16.msra.mxu1 %v2528_v4 }
   0x8   :  { %199 = vmatprep.subr.bf16.mxu0 %v2530_v5  ;;  %380 = vmatprep.subr.bf16.mxu1 %v2530_v5 }
   0xa   :  { %2021 = vmatmul.mubr.msk.bf16.vlgmr.msra.gmra.mrb[0].mxu0 %vm112_vm0, %v2529_v6  ;;  %2046 = vmatmul.mubr.msk.bf16.vlgmr.msra.gmra.mrb[0].mxu1 %vm112_vm0, %v2532_v7 }
   0xb   :  { %200 = vmatpush1.bf16.msra.mxu0 %v2533_v8  ;;  %381 = vmatpush1.bf16.msra.mxu1 %v2533_v8 }
   0xc   :  { %201 = vmatprep.subr.bf16.mxu0 %v2534_v9  ;;  %382 = vmatprep.subr.bf16.mxu1 %v2534_v9 }
   0xd   :  { %231 = vmatprep.mubr.bf16.mxu0 %v2648_v2  ;;  %412 = vmatprep.mubr.bf16.mxu1 %v2648_v2 }
   0xf   :  { %202 = vmatpush1.bf16.msra.mxu0 %v2536_v10  ;;  %383 = vmatpush1.bf16.msra.mxu1 %v2536_v10 }
  0x10   :  { %282 = vmatprep.subr.bf16.mxu0 %v2537_v11  ;;  %438 = vmatprep.subr.bf16.mxu1 %v2537_v11 }
  0x16   :  { %2033 = vmatmul.mubr.msk.bf16.vlgmr.msra.gmra.mrb[0].mxu0 %vm112_vm0, %v2532_v7  ;;  %2047 = vmatmul.mubr.msk.bf16.vlgmr.msra.gmra.mrb[0].mxu1 %vm112_vm0, %v2539_v12 }
  0x17   :  { %283 = vmatpush1.bf16.msra.mxu0 %v2540_v13  ;;  %439 = vmatpush1.bf16.msra.mxu1 %v2540_v13 }
  0x18   :  { %284 = vmatprep.subr.bf16.mxu0 %v2541_v14  ;;  %440 = vmatprep.subr.bf16.mxu1 %v2541_v14 }
  0x19   :  { %314 = vmatprep.mubr.bf16.mxu0 %v2648_v2  ;;  %470 = vmatprep.mubr.bf16.mxu1 %v2648_v2 }
  0x1b   :  { %285 = vmatpush1.bf16.msra.mxu0 %v2543_v15  ;;  %441 = vmatpush1.bf16.msra.mxu1 %v2543_v15 }
  0x1c   :  { %502 = vmatprep.subr.bf16.mxu0 %v2523_v0  ;;  %674 = vmatprep.subr.bf16.mxu1 %v2523_v0 }
  0x22   :  { %2045 = vmatmul.mubr.msk.bf16.vlgmr.msra.gmra.mrb[0].mxu0 %vm112_vm0, %v2539_v12  ;;  %2051 = vmatmul.mubr.msk.bf16.vlgmr.msra.gmra.mrb[0].mxu1 %vm112_vm0, %v2544_v16 }
  0x23   :  { %503 = vmatpush1.bf16.msra.mxu0 %v2525_v1  ;;  %675 = vmatpush1.bf16.msra.mxu1 %v2525_v1 }
  0x24   :  { %504 = vmatprep.subr.bf16.mxu0 %v2526_v3  ;;  %676 = vmatprep.subr.bf16.mxu1 %v2526_v3 }
  0x25   :  { %12 = vsyncpa [#allocation5], 0  ;;  %534 = vmatprep.mubr.bf16.mxu0 %v2648_v2  ;;  %706 = vmatprep.mubr.bf16.mxu1 %v2648_v2  ;;  %v2546_v18 = vld [vmem:[%s3487_s0 + $0x8] ss:$0 sps:$4 sm:$0x11]   ;;  %v611_v19 = vshll.u32 %v2545_v17, 16  ;;  %v30_v61 = vlaneseq }
  0x26   :  { %v609_v20 = vshrl.u32 %v2545_v17, 16  ;;  %v616_v22 = vshll.u32 %v2546_v18, 16  ;;  %v2547_v25 = vld [vmem:[%s3487_s0 + $0xc] sm:$0xff]   ;;  %vm607_vm1 = vsmask.f32 7424  ;;  %vm854_vm2 = vcmask 1040384  }
  0x27   :  { %505 = vmatpush1.bf16.msra.mxu0 %v2528_v4  ;;  %677 = vmatpush1.bf16.msra.mxu1 %v2528_v4  ;;  %v613_v21 = vrot.slane %v611_v19, 1  ;;  %v2548_v27 = vld [vmem:[%s3487_s0 + $0x14] ss:$0 sps:$4 sm:$0x11]   ;;  %v782_v28 = vshll.u32 %v2547_v25, 16  ;;  %v780_v29 = vshrl.u32 %v2547_v25, 16 }
  0x28   :  { %549 = vmatprep.subr.bf16.mxu0 %v2530_v5  ;;  %721 = vmatprep.subr.bf16.mxu1 %v2530_v5  ;;  %v618_v24 = vrot.slane %v616_v22, 1  ;;  %v787_v31 = vshll.u32 %v2548_v27, 16  ;;  %v2551_v32 = vld [vmem:[%s3490_s3 + $0x4] ss:$8 sps:$4 sm:$0xff]   ;;  %v2549_v36 = vld [vmem:[%s3490_s3] ss:$8 sps:$4 sm:$0xff]  }
  0x29   :  { %v614_v23 = vor.u32 %v613_v21, %v609_v20  ;;  %v784_v30 = vrot.slane %v782_v28, 1  ;;  %v2554_v37 = vld [vmem:[%s3490_s3 + $0x14] ss:$8 sps:$4 sm:$0xff]   ;;  %v2552_v38 = vld [vmem:[%s3490_s3 + $0x10] ss:$8 sps:$4 sm:$0xff]   ;;  %v2842_v62 = vshrl.u32 %v30_v61, 7 }
  0x2a   :  { %2052 = vmatmul.mubr.msk.bf16.vlgmr.msra.gmra.mrb[4].mxu0 %vm112_vm0, %v2539_v12  ;;  %2057 = vmatmul.mubr.msk.bf16.vlgmr.msra.gmra.mrb[4].mxu1 %vm112_vm0, %v2544_v16  ;;  %v789_v34 = vrot.slane %v787_v31, 1  ;;  %v2557_v39 = vld [vmem:[%s3490_s3 + $0x24] ss:$8 sps:$4 sm:$0xff]   ;;  %v2555_v40 = vld [vmem:[%s3490_s3 + $0x20] ss:$8 sps:$4 sm:$0xff]   ;;  %vm898_vm10 = vcmask 1043456  }
  0x2b   :  { %550 = vmatpush1.bf16.msra.mxu0 %v2533_v8  ;;  %722 = vmatpush1.bf16.msra.mxu1 %v2533_v8  ;;  %v619_v26 = vsel %vm607_vm1, %v614_v23, %v618_v24  ;;  %v785_v33 = vor.u32 %v784_v30, %v780_v29  ;;  %v2560_v41 = vld [vmem:[%s3490_s3 + $0x34] ss:$8 sps:$4 sm:$0xff]   ;;  %v2558_v42 = vld [vmem:[%s3490_s3 + $0x30] ss:$8 sps:$4 sm:$0xff]   ;;  %v2563_v43 = vld [vmem:[%s3490_s3 + $0x44] ss:$8 sps:$4 sm:$0xff]  }
  0x2c   :  { %551 = vmatprep.subr.bf16.mxu0 %v2534_v9  ;;  %723 = vmatprep.subr.bf16.mxu1 %v2534_v9  ;;  %v2561_v44 = vld [vmem:[%s3490_s3 + $0x40] ss:$8 sps:$4 sm:$0xff]   ;;  %v2566_v45 = vld [vmem:[%s3490_s3 + $0x54] ss:$8 sps:$4 sm:$0xff]   ;;  %v2564_v46 = vld [vmem:[%s3490_s3 + $0x50] ss:$8 sps:$4 sm:$0xff]  }
  0x2d   :  { %581 = vmatprep.mubr.bf16.mxu0 %v2648_v2  ;;  %753 = vmatprep.mubr.bf16.mxu1 %v2648_v2  ;;  %v790_v35 = vsel %vm607_vm1, %v785_v33, %v789_v34  ;;  %v2569_v47 = vld [vmem:[%s3490_s3 + $0x64] ss:$8 sps:$4 sm:$0xff]   ;;  %v2567_v48 = vld [vmem:[%s3490_s3 + $0x60] ss:$8 sps:$4 sm:$0xff]   ;;  %v2572_v49 = vld [vmem:[%s3490_s3 + $0x74] ss:$8 sps:$4 sm:$0xff]  }
  0x2e   :  { %vm855_vm3 = vsmask.f32 256  ;;  %v2570_v50 = vld [vmem:[%s3490_s3 + $0x70] ss:$8 sps:$4 sm:$0xff]   ;;  %v857_v52 = vld [vmem:[#allocation2] sm:$0x1] }
  0x2f   :  { %552 = vmatpush1.bf16.msra.mxu0 %v2536_v10  ;;  %724 = vmatpush1.bf16.msra.mxu1 %v2536_v10  ;;  %vm2830_vm4 = vmand %vm854_vm2, %vm855_vm3  ;;  %vm863_vm5 = vsmask.f32 7938  ;;  %v865_v54 = vld [vmem:[#allocation2 + $0x8] sm:$0x1]  ;;  %v868_v55 = vld [vmem:[#allocation2 + $0x14] sm:$0x1] }
  0x30   :  { %623 = vmatprep.subr.bf16.mxu0 %v2537_v11  ;;  %794 = vmatprep.subr.bf16.mxu1 %v2537_v11  ;;  %v858_v53 = vsel %vm2830_vm4, 0, %v857_v52  ;;  %vm864_vm6 = vmand %vm854_vm2, %vm863_vm5  ;;  %v2575_v56 = vld [vmem:[%s3490_s3 + $0x84] ss:$8 sps:$4 sm:$0xff]   ;;  %v32_v63 = vsub.s32 0, %v2842_v62  ;;  %v28_v0 = vld [vmem:[%s3489_s2] sm:$0x3] }
  0x31   :  { %859 = vst [vmem:[#allocation2] sm:$0x1] %v858_v53  ;;  %v866_v57 = vsel %vm864_vm6, 0, %v865_v54  ;;  %v869_v58 = vsel %vm864_vm6, 0, %v868_v55  ;;  %v860_v59 = vld [vmem:[#allocation2 + $0xc] sm:$0x1]  ;;  %vm2910_vm12 = vmand %vm898_vm10, %vm863_vm5 }
  0x32   :  { %867 = vst [vmem:[#allocation2 + $0x8] sm:$0x1] %v866_v57  ;;  %870 = vst [vmem:[#allocation2 + $0x14] sm:$0x1] %v869_v58  ;;  %v861_v60 = vsel %vm2830_vm4, 0, %v860_v59  ;;  %v36_v1 = vsub.s32 1, %v2842_v62  ;;  %v2851_v3 = vrot.slane %v28_v0, %v32_v63 }
  0x33   :  { %862 = vst [vmem:[#allocation2 + $0xc] sm:$0x1] %v861_v60  ;;  %v54_v5 = vadd.s32 8, %v2842_v62  ;;  %vm876_vm11 = vsmask.f32 4368  ;;  %vm1488_vm14 = vcmask 1046528  }
  0x34   :  { %v2855_v4 = vrot.slane %v28_v0, %v36_v1  ;;  %vm2921_vm13 = vmor %vm855_vm3, %vm876_vm11  ;;  %v3027_v34 = vld [vmem:[%s3490_s3 + $0x114] ss:$8 sps:$4 sm:$0xff]   ;;  %v2609_v60 = vld [vmem:[%s3490_s3 + $0x140] ss:$8 sps:$4 sm:$0xff]   ;;  %vm1569_vm15 = vcmask 1041409   ;;  %s2652_s18 = smov [#allocation4]  }
  0x35   :  { %v66_v17 = vand.u32 7, %v54_v5  ;;  %v2615_v51 = vld [vmem:[%s3490_s3 + $0x154] ss:$8 sps:$4 sm:$0xff]   ;;  %s2008_s0 = sshll.u32 %s2652_s18, 4  ;;  %s2009_s0 = int_to_ptr.vmem [resolvable:$true] %s2008_s0 }
  0x36   :  { %2053 = vmatmul.mubr.msk.bf16.vlgmr.msra.gmra.mrb[4].mxu0 %vm112_vm0, %v2544_v16  ;;  %2058 = vmatmul.mubr.msk.bf16.vlgmr.msra.gmra.mrb[4].mxu1 %vm112_vm0, %v619_v26  ;;  %s2624_s19 = scalar_lea.vmem %s2009_s0, 32  ;;  %p2629_p1 = scmp.lt.s32.totalorder %s2009_s0, %s2009_s0 }
  0x37   :  { %624 = vmatpush1.bf16.msra.mxu0 %v2540_v13  ;;  %795 = vmatpush1.bf16.msra.mxu1 %v2540_v13  ;;  %v59_v13 = vand.u32 7, %v2842_v62  ;;  %vm2871_vm8 = vcmp.lt.s32.totalorder %v66_v17, 7  ;;  %p2625_p0 = scmp.ne.s32.totalorder %s2009_s0, %s2624_s19  ;;  %p2630_p2 = scmp.lt.s32.totalorder %s2624_s19, %s2624_s19 }
  0x38   :  { %625 = vmatprep.subr.bf16.mxu0 %v2541_v14  ;;  %796 = vmatprep.subr.bf16.mxu1 %v2541_v14  ;;  %v900_v55 = vld [vmem:[#allocation2] sm:$0xf] }
  0x39   :  { %655 = vmatprep.mubr.bf16.mxu0 %v2648_v2  ;;  %826 = vmatprep.mubr.bf16.mxu1 %v2648_v2  ;;  %vm2867_vm7 = vcmp.lt.s32.totalorder %v59_v13, 7  ;;  %v904_v61 = vld [vmem:[#allocation2 + $0x8] sm:$0x1]  ;;  %v2953_v13 = vld [vmem:[%s3490_s3 + $0xc4] ss:$8 sps:$4 sm:$0xff]   ;;  %p2631_p3 = por %p2630_p2, %p2629_p1 }
  0x3a   :  { %vm2886_vm9 = vmpackc.low %vm2871_vm8, %vm2867_vm7 }
  0x3b   :  { %626 = vmatpush1.bf16.msra.mxu0 %v2543_v15  ;;  %797 = vmatpush1.bf16.msra.mxu1 %v2543_v15  ;;  %p2632_p4 = pnand %p2631_p3, %p2625_p0 }
  0x3c   :  { %1386 = vmatprep.subr.bf16.mxu1 %v2551_v32  ;;  %1047 = vmatprep.subr.bf16.mxu0 %v2551_v32 }
  0x42   :  { %2056 = vmatmul.mubr.msk.bf16.vlgmr.msra.gmra.mrb[4].mxu0 %vm112_vm0, %v619_v26  ;;  %2064 = vmatmul.mubr.msk.bf16.vlgmr.msra.gmra.mrb[4].mxu1 %vm112_vm0, %v790_v35  ;;  %vm2650_vm0 = vmmov 0  }
  0x43   :  { %1387 = vmatpush1.bf16.msra.mxu1 %v2549_v36  ;;  %1418 = vmatprep.mubr.bf16.mxu1 %v2648_v2 }
  0x44   :  { %1388 = vmatprep.subr.bf16.mxu1 %v2554_v37  ;;  %1048 = vmatpush1.bf16.msra.mxu0 %v2549_v36 }
  0x45   :  { %1049 = vmatprep.subr.bf16.mxu0 %v2554_v37  ;;  %1079 = vmatprep.mubr.bf16.mxu0 %v2648_v2  ;;  %v3036_v37 = vld [vmem:[%s3490_s3 + $0x110] ss:$8 sps:$4 sm:$0xff]  }
  0x47   :  { %1389 = vmatpush1.bf16.msra.mxu1 %v2552_v38 }
  0x48   :  { %1390 = vmatprep.subr.bf16.mxu1 %v2557_v39  ;;  %1050 = vmatpush1.bf16.msra.mxu0 %v2552_v38 }
  0x49   :  { %1051 = vmatprep.subr.bf16.mxu0 %v2557_v39 }
  0x4b   :  { %1391 = vmatpush1.bf16.msra.mxu1 %v2555_v40 }
  0x4c   :  { %1392 = vmatprep.subr.bf16.mxu1 %v2560_v41  ;;  %1052 = vmatpush1.bf16.msra.mxu0 %v2555_v40 }
  0x4d   :  { %1053 = vmatprep.subr.bf16.mxu0 %v2560_v41 }
  0x4f   :  { %1393 = vmatpush1.bf16.msra.mxu1 %v2558_v42 }
  0x50   :  { %1394 = vmatprep.subr.bf16.mxu1 %v2563_v43  ;;  %1054 = vmatpush1.bf16.msra.mxu0 %v2558_v42  ;;  %v2880_v42 = vld [vmem:[%s3490_s3 + $0x80] ss:$8 sps:$4 sm:$0xff]  }
  0x51   :  { %1055 = vmatprep.subr.bf16.mxu0 %v2563_v43  ;;  %v1602_v43 = vld [vmem:[%s3492_s5] sm:$0xff] }
  0x53   :  { %1395 = vmatpush1.bf16.msra.mxu1 %v2561_v44 }
  0x54   :  { %1056 = vmatpush1.bf16.msra.mxu0 %v2561_v44  ;;  %1396 = vmatprep.subr.bf16.mxu1 %v2566_v45 }
  0x55   :  { %1057 = vmatprep.subr.bf16.mxu0 %v2566_v45 }
  0x57   :  { %1397 = vmatpush1.bf16.msra.mxu1 %v2564_v46 }
  0x58   :  { %1058 = vmatpush1.bf16.msra.mxu0 %v2564_v46  ;;  %1398 = vmatprep.subr.bf16.mxu1 %v2569_v47  ;;  %v2897_v46 = vld [vmem:[%s3490_s3 + $0x94] ss:$8 sps:$4 sm:$0xff]  }
  0x59   :  { %1059 = vmatprep.subr.bf16.mxu0 %v2569_v47 }
  0x5b   :  { %1399 = vmatpush1.bf16.msra.mxu1 %v2567_v48 }
  0x5c   :  { %1060 = vmatpush1.bf16.msra.mxu0 %v2567_v48  ;;  %1400 = vmatprep.subr.bf16.mxu1 %v2572_v49 }
  0x5d   :  { %1061 = vmatprep.subr.bf16.mxu0 %v2572_v49  ;;  %v2905_v49 = vld [vmem:[%s3490_s3 + $0x90] ss:$8 sps:$4 sm:$0xff]  }
  0x5f   :  { %1401 = vmatpush1.bf16.msra.mxu1 %v2570_v50 }
  0x60   :  { %1062 = vmatpush1.bf16.msra.mxu0 %v2570_v50  ;;  %1433 = vmatprep.subr.bf16.mxu1 %v2575_v56 }
  0x61   :  { %1191 = vmatprep.subr.bf16.mxu0 %v2575_v56  ;;  %v2918_v56 = vld [vmem:[%s3490_s3 + $0xa4] ss:$8 sps:$4 sm:$0xff]  }
  0xf5   :  { %v316_v6 = vpop.f32.mrb[0].mxu0  ;;  %v472_v7 = vpop.f32.mrb[0].mxu1 }
  0xf6   :  { %v2446_v8 = vadd.f32 %v316_v6, %v2851_v3  ;;  %v2450_v9 = vadd.f32 %v472_v7, %v2851_v3  ;;  %v318_v10 = vpop.f32.mrb[1].mxu0  ;;  %v474_v11 = vpop.f32.mrb[1].mxu1 }
  0xf7   :  { %v2447_v12 = vadd.f32 %v318_v10, %v2855_v4  ;;  %v2451_v14 = vadd.f32 %v474_v11, %v2855_v4  ;;  %v320_v15 = vpop.f32.mrb[2].mxu0  ;;  %v476_v16 = vpop.f32.mrb[2].mxu1 }
  0xf8   :  { %v329_v18 = vmax.f32 %v2446_v8, 0.0  ;;  %v485_v19 = vmax.f32 %v2450_v9, 0.0  ;;  %v2448_v20 = vadd.f32 %v320_v15, %v2851_v3  ;;  %v2452_v21 = vadd.f32 %v476_v16, %v2851_v3  ;;  %v322_v22 = vpop.f32.mrb[3].mxu0  ;;  %v478_v23 = vpop.f32.mrb[3].mxu1  ;;  %v2931_v8 = vld [vmem:[%s3490_s3 + $0xa0] ss:$8 sps:$4 sm:$0xff]  }
  0xf9   :  { %v330_v24 = vmax.f32 %v2447_v12, 0.0  ;;  %v486_v25 = vmax.f32 %v2451_v14, 0.0  ;;  %v2449_v26 = vadd.f32 %v322_v22, %v2855_v4  ;;  %v2453_v27 = vadd.f32 %v478_v23, %v2855_v4  ;;  %v2937_v9 = vld [vmem:[%s3490_s3 + $0xb4] ss:$8 sps:$4 sm:$0xff]   ;;  %v2947_v12 = vld [vmem:[%s3490_s3 + $0xb0] ss:$8 sps:$4 sm:$0xff]  }
  0xfa   :  { %v331_v28 = vmax.f32 %v2448_v20, 0.0  ;;  %v487_v29 = vmax.f32 %v2452_v21, 0.0  ;;  %v2959_v14 = vld [vmem:[%s3490_s3 + $0xc0] ss:$8 sps:$4 sm:$0xff]   ;;  %v2965_v15 = vld [vmem:[%s3490_s3 + $0xd4] ss:$8 sps:$4 sm:$0xff]  }
  0xfb   :  { %v489_v30 = vmax.f32 %v329_v18, %v330_v24  ;;  %v491_v31 = vmax.f32 %v485_v19, %v486_v25  ;;  %v332_v32 = vmax.f32 %v2449_v26, 0.0  ;;  %v488_v33 = vmax.f32 %v2453_v27, 0.0  ;;  %v2971_v16 = vld [vmem:[%s3490_s3 + $0xd0] ss:$8 sps:$4 sm:$0xff]   ;;  %v2977_v19 = vld [vmem:[%s3490_s3 + $0xe4] ss:$8 sps:$4 sm:$0xff]  }
  0xfd   :  { %v493_v35 = vmax.f32 %v489_v30, %v491_v31  ;;  %v490_v36 = vmax.f32 %v331_v28, %v332_v32  ;;  %v492_v38 = vmax.f32 %v487_v29, %v488_v33 }
  0xff   :  { %v499_v39 = vsel %vm2867_vm7, %v493_v35, 0.0  ;;  %v494_v40 = vmax.f32 %v490_v36, %v492_v38 }
 0x100   :  { %v2165_v41 = vpack.c.bf16 %v499_v39, %v499_v39 }
 0x101   :  { %v500_v44 = vsel %vm2871_vm8, %v494_v40, 0.0  ;;  %v2892_v45 = vpack.c.bf16 %v494_v40, %v493_v35  ;;  %v2989_v35 = vld [vmem:[%s3490_s3 + $0xe0] ss:$8 sps:$4 sm:$0xff]  }
 0x102   :  { %v879_v47 = vshrl.u32 %v2165_v41, 16  ;;  %v2166_v48 = vpack.c.bf16 %v500_v44, %v500_v44  ;;  %v882_v52 = vshll.u32 %v2165_v41, 16 }
 0x103   :  { %2158 = vmatmul.mubr.msk.bf16.vlgmr.msra.gmra.mrb[8].mxu1 %vm2886_vm9, %v2892_v45 }
 0x104   :  { %v881_v50 = vrot.slane %v879_v47, 7  ;;  %v887_v53 = vshrl.u32 %v2166_v48, 16  ;;  %1434 = vmatpush1.bf16.msra.mxu1 %v2880_v42  ;;  %1465 = vmatprep.mubr.bf16.mxu1 %v2648_v2  ;;  %v890_v59 = vshll.u32 %v2166_v48, 16 }
 0x105   :  { %1435 = vmatprep.subr.bf16.mxu1 %v2897_v46 }
 0x106   :  { %v884_v57 = vor.u32 %v882_v52, %v881_v50  ;;  %v889_v58 = vrot.slane %v887_v53, 7  ;;  %v885_v0 = vrot.slane %v881_v50, 4  ;;  %v3003_v53 = vld [vmem:[%s3490_s3 + $0xf0] ss:$8 sps:$4 sm:$0xff]  }
 0x108   :  { %v901_v5 = vsel %vm2910_vm12, %v884_v57, %v900_v55  ;;  %v892_v6 = vor.u32 %v890_v59, %v889_v58  ;;  %v894_v7 = vrot.slane %v889_v58, 4  ;;  %1436 = vmatpush1.bf16.msra.mxu1 %v2905_v49  ;;  %v3009_v58 = vld [vmem:[%s3490_s3 + $0x104] ss:$8 sps:$4 sm:$0xff]  }
 0x109   :  { %902 = vst [vmem:[#allocation2] sm:$0xf] %v901_v5  ;;  %1437 = vmatprep.subr.bf16.mxu1 %v2918_v56  ;;  %v3017_v5 = vld [vmem:[%s3490_s3 + $0x100] ss:$8 sps:$4 sm:$0xff]  }
 0x10a   :  { %v893_v10 = vsel %vm2921_vm13, %v885_v0, %v892_v6  ;;  %v905_v11 = vsel %vm2830_vm4, %v894_v7, %v904_v61 }
 0x10b   :  { %903 = vst [vmem:[#allocation2 + $0x4] sm:$0xf] %v893_v10  ;;  %906 = vst [vmem:[#allocation2 + $0x8] sm:$0x1] %v905_v11 }
 0x10c   :  { %1438 = vmatpush1.bf16.msra.mxu1 %v2931_v8 }
 0x10d   :  { %1439 = vmatprep.subr.bf16.mxu1 %v2937_v9 }
 0x110   :  { %1440 = vmatpush1.bf16.msra.mxu1 %v2947_v12 }
 0x111   :  { %1441 = vmatprep.subr.bf16.mxu1 %v2953_v13 }
 0x114   :  { %1442 = vmatpush1.bf16.msra.mxu1 %v2959_v14 }
 0x115   :  { %v657_v17 = vpop.f32.mrb[4].mxu0  ;;  %v828_v18 = vpop.f32.mrb[4].mxu1  ;;  %1443 = vmatprep.subr.bf16.mxu1 %v2965_v15 }
 0x116   :  { %v2454_v20 = vadd.f32 %v657_v17, %v2851_v3  ;;  %v2458_v21 = vadd.f32 %v828_v18, %v2851_v3  ;;  %v659_v22 = vpop.f32.mrb[5].mxu0  ;;  %v830_v23 = vpop.f32.mrb[5].mxu1 }
 0x117   :  { %v2455_v24 = vadd.f32 %v659_v22, %v2855_v4  ;;  %v2459_v25 = vadd.f32 %v830_v23, %v2855_v4  ;;  %v661_v26 = vpop.f32.mrb[6].mxu0  ;;  %v832_v27 = vpop.f32.mrb[6].mxu1  ;;  %v3043_v22 = vld [vmem:[%s3490_s3 + $0x124] ss:$8 sps:$4 sm:$0xff]  }
 0x118   :  { %v670_v28 = vmax.f32 %v2454_v20, 0.0  ;;  %v841_v29 = vmax.f32 %v2458_v21, 0.0  ;;  %v2456_v30 = vadd.f32 %v661_v26, %v2851_v3  ;;  %v2460_v31 = vadd.f32 %v832_v27, %v2851_v3  ;;  %1444 = vmatpush1.bf16.msra.mxu1 %v2971_v16  ;;  %v663_v32 = vpop.f32.mrb[7].mxu0  ;;  %v834_v33 = vpop.f32.mrb[7].mxu1  ;;  %v2997_v3 = vld [vmem:[%s3490_s3 + $0xf4] ss:$8 sps:$4 sm:$0xff]  }
 0x119   :  { %v671_v36 = vmax.f32 %v2455_v24, 0.0  ;;  %v842_v38 = vmax.f32 %v2459_v25, 0.0  ;;  %v2457_v39 = vadd.f32 %v663_v32, %v2855_v4  ;;  %v2461_v40 = vadd.f32 %v834_v33, %v2855_v4  ;;  %1445 = vmatprep.subr.bf16.mxu1 %v2977_v19  ;;  %v933_v21 = vld [vmem:[#allocation2 + $0xc] sm:$0xf]  ;;  %v937_v26 = vld [vmem:[#allocation2 + $0x14] sm:$0x1] }
 0x11a   :  { %v672_v41 = vmax.f32 %v2456_v30, 0.0  ;;  %v843_v44 = vmax.f32 %v2460_v31, 0.0  ;;  %v2603_v31 = vld [vmem:[%s3490_s3 + $0x120] ss:$8 sps:$4 sm:$0xff]   ;;  %v2608_v32 = vld [vmem:[%s3490_s3 + $0x134] ss:$8 sps:$4 sm:$0xff]  }
 0x11b   :  { %v845_v47 = vmax.f32 %v670_v28, %v671_v36  ;;  %v847_v48 = vmax.f32 %v841_v29, %v842_v38  ;;  %v673_v50 = vmax.f32 %v2457_v39, 0.0  ;;  %v844_v52 = vmax.f32 %v2461_v40, 0.0  ;;  %v2606_v36 = vld [vmem:[%s3490_s3 + $0x130] ss:$8 sps:$4 sm:$0xff]   ;;  %v2611_v38 = vld [vmem:[%s3490_s3 + $0x144] ss:$8 sps:$4 sm:$0xff]  }
 0x11c   :  { %1446 = vmatpush1.bf16.msra.mxu1 %v2989_v35  ;;  %v2613_v40 = vld [vmem:[%s3490_s3 + $0x150] ss:$8 sps:$4 sm:$0xff]  }
 0x11d   :  { %v849_v4 = vmax.f32 %v845_v47, %v847_v48  ;;  %v846_v55 = vmax.f32 %v672_v41, %v673_v50  ;;  %v848_v57 = vmax.f32 %v843_v44, %v844_v52  ;;  %1447 = vmatprep.subr.bf16.mxu1 %v2997_v3  ;;  %v2618_v41 = vld [vmem:[%s3490_s3 + $0x164] ss:$8 sps:$4 sm:$0xff]   ;;  %v2616_v44 = vld [vmem:[%s3490_s3 + $0x160] ss:$8 sps:$4 sm:$0xff]  }
 0x11e   :  { %v2622_v47 = vld [vmem:[#allocation2] sm:$0xfe]   ;;  %v2623_v48 = vld [vmem:[#allocation2 + $0x8] ss:$0 sps:$4 sm:$0x11]  }
 0x11f   :  { %v851_v59 = vsel %vm2867_vm7, %v849_v4, 0.0  ;;  %v850_v61 = vmax.f32 %v846_v55, %v848_v57  ;;  %v1490_v50 = vrot.slane %v2623_v48, 1 }
 0x120   :  { %v2167_v0 = vpack.c.bf16 %v851_v59, %v851_v59  ;;  %1448 = vmatpush1.bf16.msra.mxu1 %v3003_v53  ;;  %v1605_v59 = vld [vmem:[%s3492_s5 + $0x18] sm:$0xff] }
 0x121   :  { %v852_v6 = vsel %vm2871_vm8, %v850_v61, 0.0  ;;  %v3021_v7 = vpack.c.bf16 %v850_v61, %v849_v4  ;;  %1493 = vmatprep.subr.bf16.mxu1 %v3009_v58  ;;  %v1653_v4 = vld [vmem:[%s3492_s5 + $0x198] sm:$0xff]  ;;  %v1636_v61 = vld [vmem:[%s3492_s5 + $0x110] sm:$0xff] }
 0x122   :  { %v913_v10 = vshrl.u32 %v2167_v0, 16  ;;  %v2168_v11 = vpack.c.bf16 %v852_v6, %v852_v6  ;;  %v916_v18 = vshll.u32 %v2167_v0, 16  ;;  %v1622_v6 = vld [vmem:[%s3492_s5 + $0xa0] sm:$0xff] }
 0x123   :  { %2161 = vmatmul.mubr.msk.bf16.vlgmr.msra.gmra.mrb[8].mxu1 %vm2886_vm9, %v3021_v7 }
 0x124   :  { %v915_v17 = vrot.slane %v913_v10, 7  ;;  %v921_v20 = vshrl.u32 %v2168_v11, 16  ;;  %1494 = vmatpush1.bf16.msra.mxu1 %v3017_v5  ;;  %1525 = vmatprep.mubr.bf16.mxu1 %v2648_v2  ;;  %v924_v25 = vshll.u32 %v2168_v11, 16  ;;  %v1654_v11 = vld [vmem:[%s3492_s5 + $0x1a0] sm:$0xff] }
 0x125   :  { %1495 = vmatprep.subr.bf16.mxu1 %v3027_v34 }
 0x126   :  { %v918_v23 = vor.u32 %v916_v18, %v915_v17  ;;  %v923_v24 = vrot.slane %v921_v20, 7  ;;  %v919_v27 = vrot.slane %v915_v17, 4  ;;  %v1655_v17 = vld [vmem:[%s3492_s5 + $0x1a8] sm:$0xff]  ;;  %v1606_v20 = vld [vmem:[%s3492_s5 + $0x20] sm:$0xff] }
 0x127   :  { %v2366_v18 = vpack.c.bf16 %v1655_v17, %v1654_v11 }
 0x128   :  { %v934_v28 = vsel %vm2910_vm12, %v918_v23, %v933_v21  ;;  %v926_v29 = vor.u32 %v924_v25, %v923_v24  ;;  %v928_v30 = vrot.slane %v923_v24, 4  ;;  %1496 = vmatpush1.bf16.msra.mxu1 %v3036_v37  ;;  %v1638_v21 = vld [vmem:[%s3492_s5 + $0x120] sm:$0xff]  ;;  %v1639_v23 = vld [vmem:[%s3492_s5 + $0x128] sm:$0xff]  ;;  %v1624_v25 = vld [vmem:[%s3492_s5 + $0xb0] sm:$0xff] }
 0x129   :  { %935 = vst [vmem:[#allocation2 + $0xc] sm:$0xf] %v934_v28  ;;  %1497 = vmatprep.subr.bf16.mxu1 %v3043_v22  ;;  %v2368_v24 = vpack.c.bf16 %v1639_v23, %v1638_v21 }
 0x12a   :  { %v927_v33 = vsel %vm2921_vm13, %v919_v27, %v926_v29  ;;  %v938_v54 = vsel %vm2830_vm4, %v928_v30, %v937_v26  ;;  %v1625_v26 = vld [vmem:[%s3492_s5 + $0xb8] sm:$0xff]  ;;  %v1656_v27 = vld [vmem:[%s3492_s5 + $0x1b0] sm:$0xff] }
 0x12b   :  { %936 = vst [vmem:[#allocation2 + $0x10] sm:$0xf] %v927_v33  ;;  %939 = vst [vmem:[#allocation2 + $0x14] sm:$0x1] %v938_v54  ;;  %v2338_v28 = vpack.c.bf16 %v1625_v26, %v1624_v25  ;;  %v1657_v29 = vld [vmem:[%s3492_s5 + $0x1b8] sm:$0xff]  ;;  %v1608_v30 = vld [vmem:[%s3492_s5 + $0x30] sm:$0xff] }
 0x12c   :  { %1498 = vmatpush1.bf16.msra.mxu1 %v2603_v31  ;;  %v1640_v54 = vld [vmem:[%s3492_s5 + $0x130] sm:$0xff]  ;;  %v1683_v25 = vld [vmem:[%s3492_s5 + $0x288] sm:$0xff] }
 0x12d   :  { %1499 = vmatprep.subr.bf16.mxu1 %v2608_v32 }
 0x130   :  { %1500 = vmatpush1.bf16.msra.mxu1 %v2606_v36 }
 0x131   :  { %1501 = vmatprep.subr.bf16.mxu1 %v2611_v38 }
 0x132   :  { %v2612_v39 = vld [vmem:[#allocation2 + $0xc] sm:$0xff]  }
 0x133   :  { %1080 = vmatmul.mubr.bf16.vlgmr.msra.gmra.mrb[8].mxu0 %v2612_v39  ;;  %v1658_v39 = vld [vmem:[%s3492_s5 + $0x1c0] sm:$0xff] }
 0x134   :  { %1502 = vmatpush1.bf16.msra.mxu1 %v2609_v60  ;;  %1192 = vmatpush1.bf16.msra.mxu0 %v2880_v42  ;;  %v2621_v42 = vld [vmem:[%s3490_s3 + $0x174] ss:$8 sps:$4 sm:$0xff]  }
 0x135   :  { %1503 = vmatprep.subr.bf16.mxu1 %v2615_v51  ;;  %1193 = vmatprep.subr.bf16.mxu0 %v2897_v46  ;;  %v2619_v46 = vld [vmem:[%s3490_s3 + $0x170] ss:$8 sps:$4 sm:$0xff]  }
 0x136   :  { %1223 = vmatprep.mubr.bf16.mxu0 %v2648_v2 }
 0x138   :  { %1504 = vmatpush1.bf16.msra.mxu1 %v2613_v40  ;;  %1194 = vmatpush1.bf16.msra.mxu0 %v2905_v49  ;;  %v1489_v49 = vrot.slane %v2622_v47, 1 }
 0x139   :  { %1505 = vmatprep.subr.bf16.mxu1 %v2618_v41  ;;  %1195 = vmatprep.subr.bf16.mxu0 %v2918_v56  ;;  %v1650_v56 = vld [vmem:[%s3492_s5 + $0x180] sm:$0xff] }
 0x13a   :  { %v1491_v52 = vsel %vm1488_vm14, %v1489_v49, %v1490_v50  ;;  %v1643_v49 = vld [vmem:[%s3492_s5 + $0x148] sm:$0xff] }
 0x13c   :  { %1506 = vmatpush1.bf16.msra.mxu1 %v2616_v44  ;;  %1196 = vmatpush1.bf16.msra.mxu0 %v2931_v8 }
 0x13d   :  { %1507 = vmatprep.subr.bf16.mxu1 %v2621_v42  ;;  %1197 = vmatprep.subr.bf16.mxu0 %v2937_v9  ;;  %v1651_v9 = vld [vmem:[%s3492_s5 + $0x188] sm:$0xff] }
 0x140   :  { %1508 = vmatpush1.bf16.msra.mxu1 %v2619_v46  ;;  %1198 = vmatpush1.bf16.msra.mxu0 %v2947_v12  ;;  %v1603_v12 = vld [vmem:[%s3492_s5 + $0x8] sm:$0xff] }
 0x141   :  { %1199 = vmatprep.subr.bf16.mxu0 %v2953_v13  ;;  %v2358_v13 = vpack.c.bf16 %v1651_v9, %v1650_v56  ;;  %v1612_v9 = vld [vmem:[%s3492_s5 + $0x50] sm:$0xff] }
 0x143   :  { %1526 = vmatmul.mubr.bf16.vlgmr.msra.gmra.mrb[8].mxu1 %v1491_v52  ;;  %2359 = vmatprep.subr.bf16.mxu1 %v2358_v13  ;;  %v1628_v52 = vld [vmem:[%s3492_s5 + $0xd0] sm:$0xff] }
 0x144   :  { %1200 = vmatpush1.bf16.msra.mxu0 %v2959_v14  ;;  %v2328_v14 = vpack.c.bf16 %v1603_v12, %v1602_v43  ;;  %v1613_v43 = vld [vmem:[%s3492_s5 + $0x58] sm:$0xff] }
 0x145   :  { %1201 = vmatprep.subr.bf16.mxu0 %v2965_v15  ;;  %v1634_v15 = vld [vmem:[%s3492_s5 + $0x100] sm:$0xff]  ;;  %v2348_v13 = vpack.c.bf16 %v1613_v43, %v1612_v9 }
 0x148   :  { %1202 = vmatpush1.bf16.msra.mxu0 %v2971_v16  ;;  %v1635_v16 = vld [vmem:[%s3492_s5 + $0x108] sm:$0xff] }
 0x149   :  { %1203 = vmatprep.subr.bf16.mxu0 %v2977_v19  ;;  %v1620_v19 = vld [vmem:[%s3492_s5 + $0x90] sm:$0xff] }
 0x14c   :  { %1204 = vmatpush1.bf16.msra.mxu0 %v2989_v35  ;;  %v2360_v35 = vpack.c.bf16 %v1635_v16, %v1634_v15  ;;  %v1645_v15 = vld [vmem:[%s3492_s5 + $0x158] sm:$0xff] }
 0x14d   :  { %1205 = vmatprep.subr.bf16.mxu0 %v2997_v3  ;;  %v1621_v3 = vld [vmem:[%s3492_s5 + $0x98] sm:$0xff] }
 0x14e   :  { %v2330_v55 = vpack.c.bf16 %v1621_v3, %v1620_v19  ;;  %2361 = vmatpush3.bf16.msra.mxu1 %v2360_v35  ;;  %v1630_v19 = vld [vmem:[%s3492_s5 + $0xe0] sm:$0xff]  ;;  %v1631_v35 = vld [vmem:[%s3492_s5 + $0xe8] sm:$0xff] }
 0x14f   :  { %v1662_v3 = vld [vmem:[%s3492_s5 + $0x1e0] sm:$0xff] }
 0x150   :  { %1206 = vmatpush1.bf16.msra.mxu0 %v3003_v53  ;;  %v1652_v53 = vld [vmem:[%s3492_s5 + $0x190] sm:$0xff] }
 0x151   :  { %1335 = vmatprep.subr.bf16.mxu0 %v3009_v58  ;;  %v2362_v57 = vpack.c.bf16 %v1653_v4, %v1652_v53  ;;  %v1604_v58 = vld [vmem:[%s3492_s5 + $0x10] sm:$0xff]  ;;  %v2350_v53 = vpack.c.bf16 %v1631_v35, %v1630_v19  ;;  %v1663_v4 = vld [vmem:[%s3492_s5 + $0x1e8] sm:$0xff] }
 0x152   :  { %v2332_v0 = vpack.c.bf16 %v1605_v59, %v1604_v58  ;;  %v2382_v58 = vpack.c.bf16 %v1663_v4, %v1662_v3  ;;  %v1699_v19 = vld [vmem:[%s3492_s5 + $0x308] sm:$0xff]  ;;  %v1684_v35 = vld [vmem:[%s3492_s5 + $0x290] sm:$0xff]  ;;  %v1685_v3 = vld [vmem:[%s3492_s5 + $0x298] sm:$0xff] }
 0x153   :  { %2120 = vmatmul.mubr.msk.bf16.vlgmr.msra.gmra.mrb[8].mxu0 %vm2886_vm9, %v2892_v45  ;;  %v1619_v45 = vld [vmem:[%s3492_s5 + $0x88] sm:$0xff]  ;;  %2363 = vmatprep.subr.bf16.mxu1 %v2362_v57 }
 0x154   :  { %1336 = vmatpush1.bf16.msra.mxu0 %v3017_v5  ;;  %1367 = vmatprep.mubr.bf16.mxu0 %v2648_v2  ;;  %v1618_v2 = vld [vmem:[%s3492_s5 + $0x80] sm:$0xff]  ;;  %v1637_v5 = vld [vmem:[%s3492_s5 + $0x118] sm:$0xff]  ;;  %v1615_v57 = vld [vmem:[%s3492_s5 + $0x68] sm:$0xff] }
 0x155   :  { %1337 = vmatprep.subr.bf16.mxu0 %v3027_v34  ;;  %v2326_v8 = vpack.c.bf16 %v1619_v45, %v1618_v2  ;;  %v2364_v34 = vpack.c.bf16 %v1637_v5, %v1636_v61  ;;  %v1629_v2 = vld [vmem:[%s3492_s5 + $0xd8] sm:$0xff]  ;;  %v1660_v45 = vld [vmem:[%s3492_s5 + $0x1d0] sm:$0xff]  ;;  %v1646_v61 = vld [vmem:[%s3492_s5 + $0x160] sm:$0xff] }
 0x156   :  { %v2346_v56 = vpack.c.bf16 %v1629_v2, %v1628_v52  ;;  %v1632_v5 = vld [vmem:[%s3492_s5 + $0xf0] sm:$0xff] }
 0x157   :  { %2365 = vmatpush3.bf16.msra.mxu1 %v2364_v34  ;;  %v1664_v34 = vld [vmem:[%s3492_s5 + $0x1f0] sm:$0xff] }
 0x158   :  { %1338 = vmatpush1.bf16.msra.mxu0 %v3036_v37  ;;  %2367 = vmatprep.subr.bf16.mxu1 %v2366_v18  ;;  %v1607_v37 = vld [vmem:[%s3492_s5 + $0x28] sm:$0xff]  ;;  %v1616_v18 = vld [vmem:[%s3492_s5 + $0x70] sm:$0xff] }
 0x159   :  { %1339 = vmatprep.subr.bf16.mxu0 %v3043_v22  ;;  %v2336_v22 = vpack.c.bf16 %v1607_v37, %v1606_v20  ;;  %v1617_v20 = vld [vmem:[%s3492_s5 + $0x78] sm:$0xff]  ;;  %v1648_v37 = vld [vmem:[%s3492_s5 + $0x170] sm:$0xff] }
 0x15a   :  { %v2356_v21 = vpack.c.bf16 %v1617_v20, %v1616_v18  ;;  %v2394_v18 = vpack.c.bf16 %v1685_v3, %v1684_v35  ;;  %v1669_v20 = vld [vmem:[%s3492_s5 + $0x218] sm:$0xff]  ;;  %v1708_v3 = vld [vmem:[%s3492_s5 + $0x350] sm:$0xff] }
 0x15b   :  { %2369 = vmatpush3.bf16.msra.mxu1 %v2368_v24  ;;  %v1682_v24 = vld [vmem:[%s3492_s5 + $0x280] sm:$0xff]  ;;  %v1677_v35 = vld [vmem:[%s3492_s5 + $0x258] sm:$0xff] }
 0x15c   :  { %1340 = vmatpush1.bf16.msra.mxu0 %v2603_v31  ;;  %v1609_v31 = vld [vmem:[%s3492_s5 + $0x38] sm:$0xff]  ;;  %v2390_v26 = vpack.c.bf16 %v1683_v25, %v1682_v24  ;;  %v1700_v25 = vld [vmem:[%s3492_s5 + $0x310] sm:$0xff] }
 0x15d   :  { %1341 = vmatprep.subr.bf16.mxu0 %v2608_v32  ;;  %v2370_v32 = vpack.c.bf16 %v1657_v29, %v1656_v27  ;;  %v2340_v33 = vpack.c.bf16 %v1609_v31, %v1608_v30  ;;  %v2649_v27 = vmov 0.0|0.0  }
 0x15f   :  { %2371 = vmatprep.subr.bf16.mxu1 %v2370_v32 }
 0x160   :  { %1342 = vmatpush1.bf16.msra.mxu0 %v2606_v36  ;;  %v1641_v36 = vld [vmem:[%s3492_s5 + $0x138] sm:$0xff] }
 0x161   :  { %1343 = vmatprep.subr.bf16.mxu0 %v2611_v38  ;;  %v2372_v38 = vpack.c.bf16 %v1641_v36, %v1640_v54 }
 0x163   :  { %2373 = vmatpush3.bf16.msra.mxu1 %v2372_v38 }
 0x164   :  { %1344 = vmatpush1.bf16.msra.mxu0 %v2609_v60  ;;  %v1626_v60 = vld [vmem:[%s3492_s5 + $0xc0] sm:$0xff] }
 0x165   :  { %1345 = vmatprep.subr.bf16.mxu0 %v2615_v51  ;;  %v1627_v51 = vld [vmem:[%s3492_s5 + $0xc8] sm:$0xff] }
 0x168   :  { %1346 = vmatpush1.bf16.msra.mxu0 %v2613_v40  ;;  %v2342_v40 = vpack.c.bf16 %v1627_v51, %v1626_v60 }
 0x169   :  { %1347 = vmatprep.subr.bf16.mxu0 %v2618_v41  ;;  %v1659_v41 = vld [vmem:[%s3492_s5 + $0x1c8] sm:$0xff] }
 0x16a   :  { %v2374_v47 = vpack.c.bf16 %v1659_v41, %v1658_v39 }
 0x16c   :  { %1348 = vmatpush1.bf16.msra.mxu0 %v2616_v44  ;;  %v1610_v44 = vld [vmem:[%s3492_s5 + $0x40] sm:$0xff]  ;;  %2375 = vmatprep.subr.bf16.mxu1 %v2374_v47 }
 0x16d   :  { %1349 = vmatprep.subr.bf16.mxu0 %v2621_v42  ;;  %v1611_v42 = vld [vmem:[%s3492_s5 + $0x48] sm:$0xff] }
 0x16e   :  { %v2344_v48 = vpack.c.bf16 %v1611_v42, %v1610_v44 }
 0x170   :  { %1350 = vmatpush1.bf16.msra.mxu0 %v2619_v46  ;;  %v1642_v46 = vld [vmem:[%s3492_s5 + $0x140] sm:$0xff] }
 0x171   :  { %2327 = vmatprep.subr.bf16.mxu0 %v2326_v8  ;;  %v2376_v50 = vpack.c.bf16 %v1643_v49, %v1642_v46  ;;  %v1661_v8 = vld [vmem:[%s3492_s5 + $0x1d8] sm:$0xff] }
 0x172   :  { %v2378_v12 = vpack.c.bf16 %v1661_v8, %v1660_v45 }
 0x173   :  { %2155 = vmatmul.mubr.msk.bf16.vlgmr.msra.gmra.mrb[8].mxu0 %vm2886_vm9, %v3021_v7  ;;  %v1623_v7 = vld [vmem:[%s3492_s5 + $0xa8] sm:$0xff]  ;;  %2377 = vmatpush3.bf16.msra.mxu1 %v2376_v50 }
 0x174   :  { %2329 = vmatpush3.bf16.msra.mxu0 %v2328_v14  ;;  %v2334_v10 = vpack.c.bf16 %v1623_v7, %v1622_v6  ;;  %v1644_v14 = vld [vmem:[%s3492_s5 + $0x150] sm:$0xff]  ;;  %2379 = vmatprep.subr.bf16.mxu1 %v2378_v12  ;;  %v1633_v7 = vld [vmem:[%s3492_s5 + $0xf8] sm:$0xff] }
 0x175   :  { %2331 = vmatprep.subr.bf16.mxu0 %v2330_v55  ;;  %v2380_v16 = vpack.c.bf16 %v1645_v15, %v1644_v14  ;;  %v1614_v55 = vld [vmem:[%s3492_s5 + $0x60] sm:$0xff]  ;;  %v2354_v11 = vpack.c.bf16 %v1633_v7, %v1632_v5  ;;  %v1667_v15 = vld [vmem:[%s3492_s5 + $0x208] sm:$0xff] }
 0x176   :  { %v2352_v59 = vpack.c.bf16 %v1615_v57, %v1614_v55  ;;  %v1666_v14 = vld [vmem:[%s3492_s5 + $0x200] sm:$0xff] }
 0x177   :  { %2381 = vmatpush3.bf16.msra.mxu1 %v2380_v16  ;;  %v1698_v16 = vld [vmem:[%s3492_s5 + $0x300] sm:$0xff] }
 0x178   :  { %2333 = vmatpush3.bf16.msra.mxu0 %v2332_v0  ;;  %v1647_v0 = vld [vmem:[%s3492_s5 + $0x168] sm:$0xff]  ;;  %2383 = vmatprep.subr.bf16.mxu1 %v2382_v58 }
 0x179   :  { %2335 = vmatprep.subr.bf16.mxu0 %v2334_v10  ;;  %v2384_v6 = vpack.c.bf16 %v1647_v0, %v1646_v61  ;;  %v1665_v10 = vld [vmem:[%s3492_s5 + $0x1f8] sm:$0xff] }
 0x17a   :  { %v2386_v17 = vpack.c.bf16 %v1665_v10, %v1664_v34  ;;  %v2392_v10 = vpack.c.bf16 %v1667_v15, %v1666_v14 }
 0x17b   :  { %2385 = vmatpush3.bf16.msra.mxu1 %v2384_v6  ;;  %v1668_v6 = vld [vmem:[%s3492_s5 + $0x210] sm:$0xff] }
 0x17c   :  { %2337 = vmatpush3.bf16.msra.mxu0 %v2336_v22  ;;  %v1649_v22 = vld [vmem:[%s3492_s5 + $0x178] sm:$0xff]  ;;  %2387 = vmatprep.subr.bf16.mxu1 %v2386_v17 }
 0x17d   :  { %2339 = vmatprep.subr.bf16.mxu0 %v2338_v28  ;;  %v2388_v23 = vpack.c.bf16 %v1649_v22, %v1648_v37  ;;  %v40_v28 = vld [vmem:[%s3491_s4] sm:$0x3] }
 0x17e   :  { %v45_v29 = vrot.slane %v40_v28, %v32_v63  ;;  %v49_v30 = vrot.slane %v40_v28, %v36_v1 }
 0x17f   :  { %2389 = vmatpush3.bf16.msra.mxu1 %v2388_v23 }
 0x180   :  { %2341 = vmatpush3.bf16.msra.mxu0 %v2340_v33  ;;  %2422 = vmatprep.subr.bf16.mxu1 %v2649_v27 }
 0x181   :  { %2343 = vmatprep.subr.bf16.mxu0 %v2342_v40 }
 0x184   :  { %2345 = vmatpush3.bf16.msra.mxu0 %v2344_v48 }
 0x185   :  { %2347 = vmatprep.subr.bf16.mxu0 %v2346_v56 }
 0x188   :  { %2349 = vmatpush3.bf16.msra.mxu0 %v2348_v13 }
 0x189   :  { %2351 = vmatprep.subr.bf16.mxu0 %v2350_v53 }
 0x18c   :  { %2353 = vmatpush3.bf16.msra.mxu0 %v2352_v59 }
 0x18d   :  { %2355 = vmatprep.subr.bf16.mxu0 %v2354_v11  ;;  %v2423_v11 = vpack.c.bf16 %v1699_v19, %v1698_v16  ;;  %v1676_v16 = vld [vmem:[%s3492_s5 + $0x250] sm:$0xff] }
 0x190   :  { %2357 = vmatpush3.bf16.msra.mxu0 %v2356_v21 }
 0x191   :  { %2391 = vmatprep.subr.bf16.mxu0 %v2390_v26  ;;  %v1701_v26 = vld [vmem:[%s3492_s5 + $0x318] sm:$0xff] }
 0x216   :  { %v1527_v31 = vpop.f32.mrb[8].mxu1 }
 0x217   :  { %v2466_v32 = vadd.f32 %v1527_v31, %v45_v29  ;;  %v1529_v33 = vpop.f32.mrb[9].mxu1 }
 0x218   :  { %v2467_v54 = vadd.f32 %v1529_v33, %v49_v30  ;;  %v1531_v36 = vpop.f32.mrb[10].mxu1  ;;  %v2396_v33 = vpack.c.bf16 %v1669_v20, %v1668_v6  ;;  %v1711_v6 = vld [vmem:[%s3492_s5 + $0x368] sm:$0xff]  ;;  %v1681_v20 = vld [vmem:[%s3492_s5 + $0x278] sm:$0xff] }
 0x219   :  { %v1540_v38 = vmax.f32 %v2466_v32, 0.0  ;;  %v2468_v60 = vadd.f32 %v1531_v36, %v45_v29  ;;  %v1533_v51 = vpop.f32.mrb[11].mxu1  ;;  %v1670_v36 = vld [vmem:[%s3492_s5 + $0x220] sm:$0xff] }
 0x21a   :  { %v1541_v39 = vmax.f32 %v2467_v54, 0.0  ;;  %v2469_v40 = vadd.f32 %v1533_v51, %v49_v30  ;;  %v2426_v54 = vpack.c.bf16 %v1701_v26, %v1700_v25  ;;  %v1702_v51 = vld [vmem:[%s3492_s5 + $0x320] sm:$0xff] }
 0x21b   :  { %v1542_v41 = vmax.f32 %v2468_v60, 0.0  ;;  %v1671_v60 = vld [vmem:[%s3492_s5 + $0x228] sm:$0xff] }
 0x21c   :  { %v1546_v44 = vmax.f32 %v1540_v38, %v1541_v39  ;;  %v1543_v42 = vmax.f32 %v2469_v40, 0.0  ;;  %v1703_v39 = vld [vmem:[%s3492_s5 + $0x328] sm:$0xff]  ;;  %v1688_v40 = vld [vmem:[%s3492_s5 + $0x2b0] sm:$0xff] }
 0x21e   :  { %v1547_v47 = vmax.f32 %v1542_v41, %v1543_v42  ;;  %v1689_v41 = vld [vmem:[%s3492_s5 + $0x2b8] sm:$0xff]  ;;  %v2400_v42 = vpack.c.bf16 %v1671_v60, %v1670_v36  ;;  %v2164_v36 = vld [vmem:[%s3493_s6] ss:$0 sm:$0xff] }
 0x246   :  { %v1369_v48 = vpop.f32.mrb[8].mxu0 }
 0x247   :  { %v2462_v46 = vadd.f32 %v1369_v48, %v45_v29  ;;  %v1371_v63 = vpop.f32.mrb[9].mxu0  ;;  %v1672_v48 = vld [vmem:[%s3492_s5 + $0x230] sm:$0xff] }
 0x248   :  { %v2463_v49 = vadd.f32 %v1371_v63, %v49_v30  ;;  %v1373_v62 = vpop.f32.mrb[10].mxu0  ;;  %v1673_v63 = vld [vmem:[%s3492_s5 + $0x238] sm:$0xff] }
 0x249   :  { %v1382_v1 = vmax.f32 %v2462_v46, 0.0  ;;  %v2464_v50 = vadd.f32 %v1373_v62, %v45_v29  ;;  %v1375_v52 = vpop.f32.mrb[11].mxu0  ;;  %v1686_v29 = vld [vmem:[%s3492_s5 + $0x2a0] sm:$0xff]  ;;  %v2402_v46 = vpack.c.bf16 %v1689_v41, %v1688_v40  ;;  %v1705_v62 = vld [vmem:[%s3492_s5 + $0x338] sm:$0xff] }
 0x24a   :  { %v1383_v2 = vmax.f32 %v2463_v49, 0.0  ;;  %v2465_v45 = vadd.f32 %v1375_v52, %v49_v30  ;;  %v1687_v30 = vld [vmem:[%s3492_s5 + $0x2a8] sm:$0xff]  ;;  %v1704_v49 = vld [vmem:[%s3492_s5 + $0x330] sm:$0xff]  ;;  %v2404_v52 = vpack.c.bf16 %v1673_v63, %v1672_v48 }
 0x24b   :  { %v1384_v56 = vmax.f32 %v2464_v50, 0.0  ;;  %v2398_v38 = vpack.c.bf16 %v1687_v30, %v1686_v29  ;;  %v1691_v50 = vld [vmem:[%s3492_s5 + $0x2c8] sm:$0xff] }
 0x24c   :  { %v1544_v8 = vmax.f32 %v1382_v1, %v1383_v2  ;;  %v1385_v9 = vmax.f32 %v2465_v45, 0.0  ;;  %v1690_v1 = vld [vmem:[%s3492_s5 + $0x2c0] sm:$0xff]  ;;  %v2432_v2 = vpack.c.bf16 %v1705_v62, %v1704_v49 }
 0x24d   :  { %v1674_v45 = vld [vmem:[%s3492_s5 + $0x240] sm:$0xff] }
 0x24e   :  { %v1548_v43 = vmax.f32 %v1544_v8, %v1546_v44  ;;  %v1545_v12 = vmax.f32 %v1384_v56, %v1385_v9  ;;  %v2651_v44 = vmov 0.0   ;;  %v2406_v56 = vpack.c.bf16 %v1691_v50, %v1690_v1  ;;  %v1675_v8 = vld [vmem:[%s3492_s5 + $0x248] sm:$0xff]  ;;  %v1706_v9 = vld [vmem:[%s3492_s5 + $0x340] sm:$0xff] }
 0x24f   :  { %v2408_v14 = vpack.c.bf16 %v1675_v8, %v1674_v45 }
 0x250   :  { %1550 = vst [vmem:[#allocation3] sm:$0xff] %v1548_v43  ;;  %v1549_v13 = vmax.f32 %v1545_v12, %v1547_v47  ;;  %v2429_v47 = vpack.c.bf16 %v1703_v39, %v1702_v51  ;;  %v1707_v43 = vld [vmem:[%s3492_s5 + $0x348] sm:$0xff]  ;;  %v1692_v12 = vld [vmem:[%s3492_s5 + $0x2d0] sm:$0xff] }
 0x251   :  { %v2435_v15 = vpack.c.bf16 %v1707_v43, %v1706_v9 }
 0x252   :  { %1551 = vst [vmem:[#allocation3 + $0x8] sm:$0xff] %v1549_v13  ;;  %v1693_v13 = vld [vmem:[%s3492_s5 + $0x2d8] sm:$0xff] }
 0x253   :  { %v2410_v19 = vpack.c.bf16 %v1693_v13, %v1692_v12 }
 0x257   :  { %v1554_v53 = vld [vmem:[#allocation3 + $0x1] sm:$0x1]  ;;  %v1558_v55 = vld [vmem:[#allocation3 + $0x3] sm:$0x1]  ;;  %v1552_v7 = vld [vmem:[#allocation3] sm:$0x1] }
 0x258   :  { %v1556_v23 = vld [vmem:[#allocation3 + $0x2] sm:$0x1]  ;;  %v1562_v31 = vld [vmem:[#allocation3 + $0x5] sm:$0x1]  ;;  %v1560_v29 = vld [vmem:[#allocation3 + $0x4] sm:$0x1] }
 0x259   :  { %v1555_v4 = vld [vmem:[#allocation3 + $0x9] sm:$0x1]  ;;  %v1559_v57 = vld [vmem:[#allocation3 + $0xb] sm:$0x1]  ;;  %v1553_v58 = vld [vmem:[#allocation3 + $0x8] sm:$0x1] }
 0x25a   :  { %v1574_v59 = vrot.slane %v1555_v4, 7  ;;  %v1584_v61 = vrot.slane %v1559_v57, 7  ;;  %v1568_v0 = vrot.slane %v1553_v58, 7  ;;  %v1557_v5 = vld [vmem:[#allocation3 + $0xa] sm:$0x1]  ;;  %v2412_v57 = vpack.c.bf16 %v1677_v35, %v1676_v16 }
 0x25b   :  { %v1579_v34 = vrot.slane %v1557_v5, 7  ;;  %v1563_v17 = vld [vmem:[#allocation3 + $0xd] sm:$0x1]  ;;  %v1564_v30 = vld [vmem:[#allocation3 + $0x6] sm:$0x1] }
 0x25c   :  { %v1575_v37 = vsel %vm1569_vm15, %v1574_v59, %v1554_v53  ;;  %v1585_v21 = vsel %vm1569_vm15, %v1584_v61, %v1558_v55  ;;  %v1570_v22 = vsel %vm1569_vm15, %v1568_v0, %v1552_v7  ;;  %v1594_v24 = vrot.slane %v1563_v17, 7  ;;  %v1709_v53 = vld [vmem:[%s3492_s5 + $0x358] sm:$0xff]  ;;  %v1694_v4 = vld [vmem:[%s3492_s5 + $0x2e0] sm:$0xff]  ;;  %v1695_v55 = vld [vmem:[%s3492_s5 + $0x2e8] sm:$0xff] }
 0x25d   :  { %1785 = vmatprep.mubr.f32.mxu0 %v1575_v37  ;;  %1855 = vmatprep.mubr.f32.mxu1 %v1585_v21  ;;  %v1580_v28 = vsel %vm1569_vm15, %v1579_v34, %v1556_v23  ;;  %v2438_v58 = vpack.c.bf16 %v1709_v53, %v1708_v3  ;;  %v1678_v59 = vld [vmem:[%s3492_s5 + $0x260] sm:$0xff]  ;;  %v2414_v61 = vpack.c.bf16 %v1695_v55, %v1694_v4  ;;  %v1679_v0 = vld [vmem:[%s3492_s5 + $0x268] sm:$0xff]  ;;  %v1696_v7 = vld [vmem:[%s3492_s5 + $0x2f0] sm:$0xff] }
 0x25e   :  { %1786 = vmatmul.mubr.f32.vlgmr.msra.gmra.mrb[12].mxu0 %v1570_v22  ;;  %1856 = vmatmul.mubr.f32.vlgmr.msra.gmra.mrb[12].mxu1 %v1580_v28  ;;  %v1595_v32 = vsel %vm1569_vm15, %v1594_v24, %v1562_v31  ;;  %v1710_v5 = vld [vmem:[%s3492_s5 + $0x360] sm:$0xff]  ;;  %v1697_v34 = vld [vmem:[%s3492_s5 + $0x2f8] sm:$0xff]  ;;  %v1680_v17 = vld [vmem:[%s3492_s5 + $0x270] sm:$0xff] }
 0x25f   :  { %2393 = vmatpush3.bf16.msra.mxu0 %v2392_v10  ;;  %2424 = vmatpush3.bf16.msra.mxu1 %v2423_v11  ;;  %v2416_v10 = vpack.c.bf16 %v1679_v0, %v1678_v59  ;;  %v2441_v11 = vpack.c.bf16 %v1711_v6, %v1710_v5  ;;  %v1712_v37 = vld [vmem:[%s3492_s5 + $0x370] sm:$0xff]  ;;  %v1713_v21 = vld [vmem:[%s3492_s5 + $0x378] sm:$0xff]  ;;  %v1561_v22 = vld [vmem:[#allocation3 + $0xc] sm:$0x1]  ;;  %v2420_v24 = vpack.c.bf16 %v1681_v20, %v1680_v17 }
 0x260   :  { %1925 = vmatprep.mubr.f32.mxu0 %v1595_v32  ;;  %2395 = vmatprep.subr.bf16.mxu0 %v2394_v18  ;;  %v2418_v18 = vpack.c.bf16 %v1697_v34, %v1696_v7  ;;  %v1565_v23 = vld [vmem:[#allocation3 + $0xe] sm:$0x1]  ;;  %v2444_v25 = vpack.c.bf16 %v1713_v21, %v1712_v37  ;;  %v1589_v26 = vrot.slane %v1561_v22, 7 }
 0x261   :  { %2425 = vmatprep.subr.bf16.mxu1 %v2649_v27  ;;  %2323 = vmatprep.mubr.msk.f32.mxu1 %vm2650_vm0, %v2651_v44  ;;  %v1599_v28 = vrot.slane %v1565_v23, 7 }
 0x262   :  { %v1590_v31 = vsel %vm1569_vm15, %v1589_v26, %v1560_v29 }
 0x263   :  { %2397 = vmatpush3.bf16.msra.mxu0 %v2396_v33  ;;  %2427 = vmatpush3.bf16.msra.mxu1 %v2426_v54  ;;  %v1600_v32 = vsel %vm1569_vm15, %v1599_v28, %v1564_v30 }
 0x264   :  { %2399 = vmatprep.subr.bf16.mxu0 %v2398_v38  ;;  %2428 = vmatprep.subr.bf16.mxu1 %v2649_v27 }
 0x267   :  { %2401 = vmatpush3.bf16.msra.mxu0 %v2400_v42  ;;  %2430 = vmatpush3.bf16.msra.mxu1 %v2429_v47 }
 0x268   :  { %2403 = vmatprep.subr.bf16.mxu0 %v2402_v46  ;;  %2431 = vmatprep.subr.bf16.mxu1 %v2649_v27 }
 0x26b   :  { %2405 = vmatpush3.bf16.msra.mxu0 %v2404_v52  ;;  %2433 = vmatpush3.bf16.msra.mxu1 %v2432_v2 }
 0x26c   :  { %2407 = vmatprep.subr.bf16.mxu0 %v2406_v56  ;;  %2434 = vmatprep.subr.bf16.mxu1 %v2649_v27 }
 0x26f   :  { %2409 = vmatpush3.bf16.msra.mxu0 %v2408_v14  ;;  %2436 = vmatpush3.bf16.msra.mxu1 %v2435_v15 }
 0x270   :  { %2411 = vmatprep.subr.bf16.mxu0 %v2410_v19  ;;  %2437 = vmatprep.subr.bf16.mxu1 %v2649_v27 }
 0x273   :  { %2413 = vmatpush3.bf16.msra.mxu0 %v2412_v57  ;;  %2439 = vmatpush3.bf16.msra.mxu1 %v2438_v58 }
 0x274   :  { %2415 = vmatprep.subr.bf16.mxu0 %v2414_v61  ;;  %2440 = vmatprep.subr.bf16.mxu1 %v2649_v27 }
 0x277   :  { %2417 = vmatpush3.bf16.msra.mxu0 %v2416_v10  ;;  %2442 = vmatpush3.bf16.msra.mxu1 %v2441_v11 }
 0x278   :  { %2419 = vmatprep.subr.bf16.mxu0 %v2418_v18  ;;  %2443 = vmatprep.subr.bf16.mxu1 %v2649_v27 }
 0x27b   :  { %2421 = vmatpush3.bf16.msra.mxu0 %v2420_v24  ;;  %2445 = vmatpush3.bf16.msra.mxu1 %v2444_v25 }
 0x27e   :  { %1926 = vmatmul.mubr.f32.vlgmr.msra.gmra.mrb[14].mxu0 %v1590_v31  ;;  %2324 = vmatmul.mubr.f32.vlgmr.msra.gmra.mrb[14].mxu1 %v1600_v32 }
 0x331   :  { %v2201_v33 = vpop.f32.mrb[12].mxu0  ;;  %v2236_v54 = vpop.f32.mrb[12].mxu1 }
 0x332   :  { %v2202_v38 = vpop.f32.mrb[13].mxu0  ;;  %v2237_v27 = vpop.f32.mrb[13].mxu1 }
 0x333   :  { %v2203_v60 = vadd.f32 %v2202_v38, %v2201_v33  ;;  %v2238_v51 = vadd.f32 %v2237_v27, %v2236_v54 }
 0x335   :  { %v1788_v39 = vadd.f32 %v2203_v60, %v2164_v36 }
 0x337   :  { %v1858_v40 = vadd.f32 %v2238_v51, %v1788_v39 }
 0x351   :  { %v2271_v41 = vpop.f32.mrb[14].mxu0  ;;  %v1997_v44 = vpop.f32.mrb[14].mxu1 }
 0x352   :  { %v2272_v42 = vpop.f32.mrb[15].mxu0  ;;  %v2325_v47 = vpop.f32.mrb[15].mxu1 }
 0x353   :  { %v2273_v48 = vadd.f32 %v2272_v42, %v2271_v41 }
 0x355   :  { %v1928_v46 = vadd.f32 %v2273_v48, %v1858_v40 }
 0x357   :  { %v1998_v63 = vadd.f32 %v1997_v44, %v1928_v46 }
 0x359   :  { %2001 = vst [vmem:[#allocation4] sm:$0x3] %v1998_v63 }
 0x35a   :  { %2635 = shalt.err (!%p2632_p4)
}
 0x35b   :  { %s2636_s21 = scalar_lea.hbm %s3494_s7, 32 }
 0x35c   :  { %p2637_p5 = scmp.ne.s32.totalorder %s3494_s7, %s2636_s21  ;;  %p2640_p6 = scmp.lt.u32.totalorder %s2636_s21, %s3494_s7 }
 0x35e   :  { %p2642_p7 = pnand %p2640_p6, %p2637_p5 }
 0x360   :  { %2645 = shalt.err (!%p2642_p7)
}
 0x361   :  { %2011 = dma.vmem_to_hbm [thread:$0]  %s2009_s0, 32, %s3494_s7, [#allocation5]  }
 0x362   :  { %2646 = dma.done.wait [#allocation5], 32  }
 0x363   :  { %2647 = vsyncadd [#allocation5], 4294967264 }
 0x364   :  { %2015 = vsyncpa [#allocation5], 1 }

</bundles_post_ra>
